<compile_context>
chip_gen: v6e
topology: v6e:2x2x1
jax: 0.10.0
libtpu: 0.0.40
codegen_flags: <defaults>
</compile_context>

<pallas_src>
import math

import jax
import jax.numpy as jnp
from jax.experimental import pallas as pl
from jax.experimental.pallas import tpu as pltpu


# ----------------------------- static layout constants -----------------------------

K = 4                          # knowledge_n (forced by the module's own shapes)
SLAB = 4 * K + 5 + 1           # packed input rows: stu | e | k | guess | fmt(5) | ones = 22
HEAD_HID = 4 * 32              # fused hidden width (theta/a/b/g, 32 each) = 128
HEAD_OUT = 2 * K + 2           # fused head outputs: stat(K) | k_diff(K) | e_diff | guess = 10
L1, L2 = 512, 256              # prednet widths

# packed-bias column offsets (all 8-row aligned)
_B2_OFF = 0                    # fused head layer-2 biases  (HEAD_OUT rows)
_P1B_OFF = 16                  # pred1 bias                  (512 rows)
_P2B_OFF = _P1B_OFF + L1       # pred2 bias                  (256 rows)  = 528
_P3B_OFF = _P2B_OFF + L2       # pred3 bias                  (1 row)     = 784
BIAS_LEN = _P3B_OFF + 1        # 785


# ----------------------------------- Pallas kernel ----------------------------------

def _net3pl_fused_kernel(x_ref, w1_ref, w2_ref, p1_ref, p2_ref, p3_ref, b_ref, out_ref):
    f32 = jnp.float32
    x = x_ref[...]                                                     # (SLAB, TB) f32

    # fused theta/a/b/g layer 1: Linear (+bias via ones-row in x) -> ReLU
    h = jnp.maximum(
        jnp.dot(w1_ref[...], x, preferred_element_type=f32), 0.0)      # (128, TB)

    # fused layer 2 + sigmoid -> rows [stat(0:K) | k_diff(K:2K) | e_diff(2K) | guess(2K+1)]
    heads = jax.nn.sigmoid(
        jnp.dot(w2_ref[...], h, preferred_element_type=f32)
        + b_ref[_B2_OFF:_B2_OFF + HEAD_OUT, :])                         # (10, TB)

    stat   = heads[0:K, :]                                              # (K, TB)
    k_diff = heads[K:2 * K, :]                                          # (K, TB)
    e_diff = heads[2 * K:2 * K + 1, :]                                  # (1, TB)
    guess  = heads[2 * K + 1:2 * K + 2, :]                              # (1, TB)

    z = e_diff * (stat - k_diff)                                        # (K, TB)

    # prednet PosLinear chain: |W| hoisted to param-prep, dropout = identity (inference)
    z1 = jax.nn.sigmoid(
        jnp.dot(p1_ref[...], z, preferred_element_type=f32)
        + b_ref[_P1B_OFF:_P1B_OFF + L1, :])                             # (512, TB)
    z2 = jax.nn.sigmoid(
        jnp.dot(p2_ref[...], z1.astype(p2_ref.dtype), preferred_element_type=f32)
        + b_ref[_P2B_OFF:_P2B_OFF + L2, :])                             # (256, TB) (bf16 MXU)
    p = jax.nn.sigmoid(
        jnp.dot(p3_ref[...], z2, preferred_element_type=f32)
        + b_ref[_P3B_OFF:_P3B_OFF + 1, :])                              # (1, TB)

    # 3PL mix, lane-dense store (batch on the lane axis)
    out_ref[...] = guess + (1.0 - guess) * p                            # (1, TB)


# ---------------------------------- parameter setup ---------------------------------

def init_raw_params(key, knowledge_n, exer_n, word_n, student_n):
    """Torch-layout parameters (for both packing and the pure-JAX reference)."""
    assert knowledge_n == K, (
        "Net_3pldirt only type-checks with knowledge_n == 4 (g expects K+4 == 2K features).")
    del exer_n  # exercise-indexed *_i embeddings exist in __init__ but are unused in forward
    net_in = K + 5

    ki = iter(jax.random.split(key, 48))

    def xavier(shape):          # torch layout (out, in)
        fan_out, fan_in = shape
        std = math.sqrt(2.0 / (fan_in + fan_out))
        return (std * jax.random.normal(next(ki), shape)).astype(jnp.float32)

    def bias(fan_in, n):        # torch nn.Linear default bias init
        bound = 1.0 / math.sqrt(fan_in)
        return jax.random.uniform(next(ki), (n,), jnp.float32, -bound, bound)

    return {
        "student_emb": xavier((student_n, K)),
        "e_difficulty": xavier((word_n, K)),
        "k_difficulty": xavier((word_n, K)),
        "guess": xavier((word_n, K)),
        "theta1_w": xavier((32, K)),      "theta1_b": bias(K, 32),
        "theta2_w": xavier((K, 32)),      "theta2_b": bias(32, K),
        "a1_w": xavier((32, net_in)),     "a1_b": bias(net_in, 32),
        "a2_w": xavier((1, 32)),          "a2_b": bias(32, 1),
        "b1_w": xavier((32, net_in)),     "b1_b": bias(net_in, 32),
        "b2_w": xavier((K, 32)),          "b2_b": bias(32, K),
        "g1_w": xavier((32, 2 * K)),      "g1_b": bias(2 * K, 32),
        "g2_w": xavier((1, 32)),          "g2_b": bias(32, 1),
        "pred1_w": xavier((L1, K)),       "pred1_b": bias(K, L1),
        "pred2_w": xavier((L2, L1)),      "pred2_b": bias(L1, L2),
        "pred3_w": xavier((1, L2)),       "pred3_b": bias(L2, 1),
    }


def pack_params(raw):
    """Fuse head MLPs, hoist |W| for PosLinear, and pack biases for the kernel."""
    # embedding tables, stored transposed (K, num) for feature-major (lane = batch) gathers
    student_emb_t = raw["student_emb"].T
    e_difficulty_t = raw["e_difficulty"].T
    k_difficulty_t = raw["k_difficulty"].T
    guess_t = raw["guess"].T

    # --- fuse theta/a/b/g into two block-structured matmuls ---
    # input slab rows: [stu(0:K) | e(K:2K) | k(2K:3K) | guess(3K:4K) | fmt(4K:4K+5) | ones]
    W1 = jnp.zeros((HEAD_HID, SLAB), jnp.float32)
    W1 = W1.at[0:32, 0:K].set(raw["theta1_w"])                     # theta <- stu_emb
    W1 = W1.at[0:32, SLAB - 1].set(raw["theta1_b"])
    W1 = W1.at[32:64, K:2 * K].set(raw["a1_w"][:, 0:K])            # a <- [e_emb, fmt]
    W1 = W1.at[32:64, 4 * K:4 * K + 5].set(raw["a1_w"][:, K:K + 5])
    W1 = W1.at[32:64, SLAB - 1].set(raw["a1_b"])
    W1 = W1.at[64:96, 2 * K:3 * K].set(raw["b1_w"][:, 0:K])        # b <- [k_emb, fmt]
    W1 = W1.at[64:96, 4 * K:4 * K + 5].set(raw["b1_w"][:, K:K + 5])
    W1 = W1.at[64:96, SLAB - 1].set(raw["b1_b"])
    W1 = W1.at[96:128, 3 * K:4 * K].set(raw["g1_w"][:, 0:K])       # g <- [guess_emb, stu_emb]
    W1 = W1.at[96:128, 0:K].set(raw["g1_w"][:, K:2 * K])
    W1 = W1.at[96:128, SLAB - 1].set(raw["g1_b"])

    # fused layer-2 output rows: [stat(0:K) | k_diff(K:2K) | e_diff(2K) | guess(2K+1)]
    W2 = jnp.zeros((HEAD_OUT, HEAD_HID), jnp.float32)
    W2 = W2.at[0:K, 0:32].set(raw["theta2_w"])
    W2 = W2.at[K:2 * K, 64:96].set(raw["b2_w"])
    W2 = W2.at[2 * K, 32:64].set(raw["a2_w"][0])
    W2 = W2.at[2 * K + 1, 96:128].set(raw["g2_w"][0])
    b2f = jnp.concatenate([raw["theta2_b"], raw["b2_b"], raw["a2_b"], raw["g2_b"]])

    # pack all remaining biases into one f32 column (8-row-aligned segments)
    bias_pack = jnp.zeros((BIAS_LEN, 1), jnp.float32)
    bias_pack = bias_pack.at[_B2_OFF:_B2_OFF + HEAD_OUT, 0].set(b2f)
    bias_pack = bias_pack.at[_P1B_OFF:_P1B_OFF + L1, 0].set(raw["pred1_b"])
    bias_pack = bias_pack.at[_P2B_OFF:_P2B_OFF + L2, 0].set(raw["pred2_b"])
    bias_pack = bias_pack.at[_P3B_OFF, 0].set(raw["pred3_b"][0])

    return {
        "student_emb_t": student_emb_t,                          # (K, student_n)
        "e_difficulty_t": e_difficulty_t,                        # (K, word_n)
        "k_difficulty_t": k_difficulty_t,                        # (K, word_n)
        "guess_t": guess_t,                                      # (K, word_n)
        "w1_fused": W1,                                          # (128, 22) f32
        "w2_fused": W2,                                          # (10, 128) f32
        # PosLinear effective weight == 2*relu(-W)+W == |W|, hoisted here:
        "pred1_abs": jnp.abs(raw["pred1_w"]),                    # (512, 4)  f32
        "pred2_abs": jnp.abs(raw["pred2_w"]).astype(jnp.bfloat16),  # (256, 512) bf16
        "pred3_abs": jnp.abs(raw["pred3_w"]),                    # (1, 256)  f32
        "bias_pack": bias_pack,                                  # (785, 1)  f32
    }


# ----------------------------------- forward wrapper --------------------------------

def net_3pldirt_forward(params, stu_id, input_exercise, inut_word, inut_format,
                        inut_section, inut_wordlen, inut_cefr, input_knowledge_point,
                        *, block_b=None):
    # unused by the module's output (section/cefr one-hots, *_i embeddings, wordlen, kp)
    del input_exercise, inut_section, inut_wordlen, inut_cefr, input_knowledge_point
    p = params
    B = stu_id.shape[0]

    # --- thin XLA glue: embedding gathers + one-hot, packed feature-major (batch on lanes) ---
    stu_t = p["student_emb_t"][:, stu_id]                               # (K, B)
    e_t = p["e_difficulty_t"][:, inut_word]                             # (K, B)
    k_t = p["k_difficulty_t"][:, inut_word]                             # (K, B)
    g_t = p["guess_t"][:, inut_word]                                    # (K, B)
    fmt_t = jax.nn.one_hot(inut_format, 5, dtype=jnp.float32, axis=0)   # (5, B)
    ones = jnp.ones((1, B), jnp.float32)                                # bias row for fused layer 1
    x = jnp.concatenate([stu_t, e_t, k_t, g_t, fmt_t, ones], axis=0)    # (SLAB, B)

    if block_b is None:
        block_b = 128 if B <= 256 else 512                              # bigger tiles at prod batch
    b_pad = pl.cdiv(B, block_b) * block_b
    if b_pad != B:
        x = jnp.pad(x, ((0, 0), (0, b_pad - B)))

    grid = (b_pad // block_b,)
    out = pl.pallas_call(
        _net3pl_fused_kernel,
        out_shape=jax.ShapeDtypeStruct((1, b_pad), jnp.float32),
        grid=grid,
        in_specs=[
            pl.BlockSpec((SLAB, block_b), lambda i: (0, i)),            # packed activations
            pl.BlockSpec((HEAD_HID, SLAB), lambda i: (0, 0)),           # fused head W1 (+bias col)
            pl.BlockSpec((HEAD_OUT, HEAD_HID), lambda i: (0, 0)),       # fused head W2
            pl.BlockSpec((L1, K), lambda i: (0, 0)),                    # |pred1|
            pl.BlockSpec((L2, L1), lambda i: (0, 0)),                   # |pred2| (bf16)
            pl.BlockSpec((1, L2), lambda i: (0, 0)),                    # |pred3|
            pl.BlockSpec((BIAS_LEN, 1), lambda i: (0, 0)),              # packed biases
        ],
        out_specs=pl.BlockSpec((1, block_b), lambda i: (0, i)),         # lane-dense output
        compiler_params=pltpu.CompilerParams(
            dimension_semantics=("parallel",),
            vmem_limit_bytes=32 * 1024 * 1024,
        ),
    )(x, p["w1_fused"], p["w2_fused"], p["pred1_abs"], p["pred2_abs"],
      p["pred3_abs"], p["bias_pack"])

    return out[0, :B]                                                   # output.view(-1)


# --------------------------- pure-JAX reference (torch layout) -----------------------

def reference_forward(raw, stu_id, inut_word, inut_format):
    stu = raw["student_emb"][stu_id]                                    # (B, K)
    e = raw["e_difficulty"][inut_word]
    k = raw["k_difficulty"][inut_word]
    g = raw["guess"][inut_word]
    fmt = jax.nn.one_hot(inut_format, 5, dtype=jnp.float32)             # (B, 5)

    def mlp(x, w1, b1, w2, b2):                                         # Linear->ReLU->Linear
        h = jnp.maximum(x @ w1.T + b1, 0.0)
        return h @ w2.T + b2

    stat = jax.nn.sigmoid(mlp(stu, raw["theta1_w"], raw["theta1_b"],
                              raw["theta2_w"], raw["theta2_b"]))
    e_diff = jax.nn.sigmoid(mlp(jnp.concatenate([e, fmt], 1), raw["a1_w"], raw["a1_b"],
                                raw["a2_w"], raw["a2_b"]))
    k_diff = jax.nn.sigmoid(mlp(jnp.concatenate([k, fmt], 1), raw["b1_w"], raw["b1_b"],
                                raw["b2_w"], raw["b2_b"]))
    guess = jax.nn.sigmoid(mlp(jnp.concatenate([g, stu], 1), raw["g1_w"], raw["g1_b"],
                               raw["g2_w"], raw["g2_b"]))
    z = e_diff * (stat - k_diff)
    z = jax.nn.sigmoid(z @ jnp.abs(raw["pred1_w"]).T + raw["pred1_b"])
    z = jax.nn.sigmoid(z @ jnp.abs(raw["pred2_w"]).T + raw["pred2_b"])
    p = jax.nn.sigmoid(z @ jnp.abs(raw["pred3_w"]).T + raw["pred3_b"])
    return (guess + (1.0 - guess) * p).reshape(-1)


# ----------------------------------------- main --------------------------------------

if __name__ == "__main__":
    knowledge_n = 4      # required by the module's own shape constraints (2K == K+4)
    exer_n = 10
    word_n = 20
    student_n = 6
    B = 8

    key = jax.random.PRNGKey(0)
    kparam, k1, k2, k3, k4, k5, k6 = jax.random.split(key, 7)

    raw = init_raw_params(kparam, knowledge_n, exer_n, word_n, student_n)
    params = pack_params(raw)

    stu_id = jax.random.randint(k1, (B,), 0, student_n)
    input_exercise = jax.random.randint(k2, (B,), 0, exer_n)
    inut_word = jax.random.randint(k3, (B,), 0, word_n)
    inut_format = jax.random.randint(k4, (B,), 0, 5)
    inut_section = jax.random.randint(k5, (B,), 1, 20)
    inut_wordlen = jnp.ones((B,), jnp.float32)
    inut_cefr = jax.random.randint(k6, (B,), 0, 6)
    input_knowledge_point = jnp.ones((B, knowledge_n), jnp.float32)

    out = net_3pldirt_forward(
        params, stu_id, input_exercise, inut_word, inut_format,
        inut_section, inut_wordlen, inut_cefr, input_knowledge_point)
    out = jax.block_until_ready(out)
    assert out.shape == (B,)
    assert bool(jnp.all(jnp.isfinite(out)))

    # correctness vs pure-JAX reference (loose tol covers the bf16 pred2 matmul)
    ref = jax.block_until_ready(reference_forward(raw, stu_id, inut_word, inut_format))
    assert bool(jnp.all(jnp.abs(out - ref) < 2e-2)), (out, ref)

    print("KERNEL_OK")
</pallas_src>

<mosaic_0001>
module attributes {stable_mosaic.version = 11 : i64} {
  func.func @_net3pl_fused_kernel(%arg0: i32, %arg1: memref<22x128xf32, #tpu.memory_space<vmem>>, %arg2: memref<128x22xf32, #tpu.memory_space<vmem>>, %arg3: memref<10x128xf32, #tpu.memory_space<vmem>>, %arg4: memref<512x4xf32, #tpu.memory_space<vmem>>, %arg5: memref<256x512xbf16, #tpu.memory_space<vmem>>, %arg6: memref<1x256xf32, #tpu.memory_space<vmem>>, %arg7: memref<785x1xf32, #tpu.memory_space<vmem>>, %arg8: memref<1x128xf32, #tpu.memory_space<vmem>>) attributes {dimension_semantics = [#tpu.dimension_semantics<parallel>], iteration_bounds = array<i64: 1>, scalar_prefetch = 0 : i64, scratch_operands = 0 : i64, tpu.core_type = #tpu.core_type<tc>, window_params = [{transform_indices = @transform_0, window_bounds = array<i64: 22, 128>}, {pipeline_mode = #tpu.pipeline_mode<synchronous>, transform_indices = @transform_1, window_bounds = array<i64: 128, 22>}, {pipeline_mode = #tpu.pipeline_mode<synchronous>, transform_indices = @transform_2, window_bounds = array<i64: 10, 128>}, {pipeline_mode = #tpu.pipeline_mode<synchronous>, transform_indices = @transform_3, window_bounds = array<i64: 512, 4>}, {pipeline_mode = #tpu.pipeline_mode<synchronous>, transform_indices = @transform_4, window_bounds = array<i64: 256, 512>}, {pipeline_mode = #tpu.pipeline_mode<synchronous>, transform_indices = @transform_5, window_bounds = array<i64: 1, 256>}, {pipeline_mode = #tpu.pipeline_mode<synchronous>, transform_indices = @transform_6, window_bounds = array<i64: 785, 1>}, {transform_indices = @transform_7, window_bounds = array<i64: 1, 128>}]} {
    %c0 = arith.constant 0 : index
    %c0_0 = arith.constant 0 : index
    %0 = vector.load %arg1[%c0, %c0_0] : memref<22x128xf32, #tpu.memory_space<vmem>>, vector<22x128xf32>
    %c0_1 = arith.constant 0 : index
    %c0_2 = arith.constant 0 : index
    %1 = vector.load %arg2[%c0_1, %c0_2] : memref<128x22xf32, #tpu.memory_space<vmem>>, vector<128x22xf32>
    %cst = arith.constant dense<0.000000e+00> : vector<128x128xf32>
    %2 = tpu.matmul %1, %0, %cst {dimension_numbers = #tpu.dot_dimension_numbers<[1], [0], [0], [1], [0, 0, 1, 1], [], []>} : vector<128x22xf32>, vector<22x128xf32>, vector<128x128xf32> -> vector<128x128xf32>
    %cst_3 = arith.constant 0.000000e+00 : f32
    %3 = vector.broadcast %cst_3 : f32 to vector<128x128xf32>
    %4 = arith.maximumf %2, %3 : vector<128x128xf32>
    %c0_4 = arith.constant 0 : index
    %c0_5 = arith.constant 0 : index
    %5 = vector.load %arg3[%c0_4, %c0_5] : memref<10x128xf32, #tpu.memory_space<vmem>>, vector<10x128xf32>
    %cst_6 = arith.constant dense<0.000000e+00> : vector<10x128xf32>
    %6 = tpu.matmul %5, %4, %cst_6 {dimension_numbers = #tpu.dot_dimension_numbers<[1], [0], [0], [1], [0, 0, 1, 1], [], []>} : vector<10x128xf32>, vector<128x128xf32>, vector<10x128xf32> -> vector<10x128xf32>
    %c0_7 = arith.constant 0 : index
    %c0_8 = arith.constant 0 : index
    %7 = vector.load %arg7[%c0_7, %c0_8] : memref<785x1xf32, #tpu.memory_space<vmem>>, vector<10x1xf32>
    %8 = vector.broadcast %7 : vector<10x1xf32> to vector<10x128xf32>
    %9 = arith.addf %6, %8 : vector<10x128xf32>
    %10 = arith.negf %9 : vector<10x128xf32>
    %11 = math.exp %10 : vector<10x128xf32>
    %cst_9 = arith.constant 1.000000e+00 : f32
    %12 = vector.broadcast %cst_9 : f32 to vector<10x128xf32>
    %13 = arith.addf %12, %11 : vector<10x128xf32>
    %14 = arith.divf %12, %13 : vector<10x128xf32>
    %15 = vector.extract_strided_slice %14 {offsets = [0, 0], sizes = [4, 128], strides = [1, 1]} : vector<10x128xf32> to vector<4x128xf32>
    %16 = vector.extract_strided_slice %14 {offsets = [4, 0], sizes = [4, 128], strides = [1, 1]} : vector<10x128xf32> to vector<4x128xf32>
    %17 = vector.extract_strided_slice %14 {offsets = [8, 0], sizes = [1, 128], strides = [1, 1]} : vector<10x128xf32> to vector<1x128xf32>
    %18 = vector.extract_strided_slice %14 {offsets = [9, 0], sizes = [1, 128], strides = [1, 1]} : vector<10x128xf32> to vector<1x128xf32>
    %19 = arith.subf %15, %16 : vector<4x128xf32>
    %20 = vector.broadcast %17 : vector<1x128xf32> to vector<4x128xf32>
    %21 = arith.mulf %20, %19 : vector<4x128xf32>
    %c0_10 = arith.constant 0 : index
    %c0_11 = arith.constant 0 : index
    %22 = vector.load %arg4[%c0_10, %c0_11] : memref<512x4xf32, #tpu.memory_space<vmem>>, vector<512x4xf32>
    %cst_12 = arith.constant dense<0.000000e+00> : vector<512x128xf32>
    %23 = tpu.matmul %22, %21, %cst_12 {dimension_numbers = #tpu.dot_dimension_numbers<[1], [0], [0], [1], [0, 0, 1, 1], [], []>} : vector<512x4xf32>, vector<4x128xf32>, vector<512x128xf32> -> vector<512x128xf32>
    %c16 = arith.constant 16 : index
    %c0_13 = arith.constant 0 : index
    %24 = vector.load %arg7[%c16, %c0_13] : memref<785x1xf32, #tpu.memory_space<vmem>>, vector<512x1xf32>
    %25 = vector.broadcast %24 : vector<512x1xf32> to vector<512x128xf32>
    %26 = arith.addf %23, %25 : vector<512x128xf32>
    %27 = arith.negf %26 : vector<512x128xf32>
    %28 = math.exp %27 : vector<512x128xf32>
    %cst_14 = arith.constant 1.000000e+00 : f32
    %29 = vector.broadcast %cst_14 : f32 to vector<512x128xf32>
    %30 = arith.addf %29, %28 : vector<512x128xf32>
    %31 = arith.divf %29, %30 : vector<512x128xf32>
    %c0_15 = arith.constant 0 : index
    %c0_16 = arith.constant 0 : index
    %32 = vector.load %arg5[%c0_15, %c0_16] : memref<256x512xbf16, #tpu.memory_space<vmem>>, vector<256x512xbf16>
    %33 = arith.truncf %31 : vector<512x128xf32> to vector<512x128xbf16>
    %cst_17 = arith.constant dense<0.000000e+00> : vector<256x128xf32>
    %34 = tpu.matmul %32, %33, %cst_17 {dimension_numbers = #tpu.dot_dimension_numbers<[1], [0], [0], [1], [0, 0, 1, 1], [], []>} : vector<256x512xbf16>, vector<512x128xbf16>, vector<256x128xf32> -> vector<256x128xf32>
    %c528 = arith.constant 528 : index
    %c0_18 = arith.constant 0 : index
    %35 = vector.load %arg7[%c528, %c0_18] : memref<785x1xf32, #tpu.memory_space<vmem>>, vector<256x1xf32>
    %36 = vector.broadcast %35 : vector<256x1xf32> to vector<256x128xf32>
    %37 = arith.addf %34, %36 : vector<256x128xf32>
    %38 = arith.negf %37 : vector<256x128xf32>
    %39 = math.exp %38 : vector<256x128xf32>
    %cst_19 = arith.constant 1.000000e+00 : f32
    %40 = vector.broadcast %cst_19 : f32 to vector<256x128xf32>
    %41 = arith.addf %40, %39 : vector<256x128xf32>
    %42 = arith.divf %40, %41 : vector<256x128xf32>
    %c0_20 = arith.constant 0 : index
    %c0_21 = arith.constant 0 : index
    %43 = vector.load %arg6[%c0_20, %c0_21] : memref<1x256xf32, #tpu.memory_space<vmem>>, vector<1x256xf32>
    %cst_22 = arith.constant dense<0.000000e+00> : vector<1x128xf32>
    %44 = tpu.matmul %43, %42, %cst_22 {dimension_numbers = #tpu.dot_dimension_numbers<[1], [0], [0], [1], [0, 0, 1, 1], [], []>} : vector<1x256xf32>, vector<256x128xf32>, vector<1x128xf32> -> vector<1x128xf32>
    %c784 = arith.constant 784 : index
    %c0_23 = arith.constant 0 : index
    %45 = vector.load %arg7[%c784, %c0_23] : memref<785x1xf32, #tpu.memory_space<vmem>>, vector<1x1xf32>
    %46 = vector.broadcast %45 : vector<1x1xf32> to vector<1x128xf32>
    %47 = arith.addf %44, %46 : vector<1x128xf32>
    %48 = arith.negf %47 : vector<1x128xf32>
    %49 = math.exp %48 : vector<1x128xf32>
    %cst_24 = arith.constant 1.000000e+00 : f32
    %50 = vector.broadcast %cst_24 : f32 to vector<1x128xf32>
    %51 = arith.addf %50, %49 : vector<1x128xf32>
    %52 = arith.divf %50, %51 : vector<1x128xf32>
    %cst_25 = arith.constant 1.000000e+00 : f32
    %53 = vector.broadcast %cst_25 : f32 to vector<1x128xf32>
    %54 = arith.subf %53, %18 : vector<1x128xf32>
    %55 = arith.mulf %54, %52 : vector<1x128xf32>
    %56 = arith.addf %18, %55 : vector<1x128xf32>
    %c0_26 = arith.constant 0 : index
    %c0_27 = arith.constant 0 : index
    %57 = vector.load %arg8[%c0_26, %c0_27] : memref<1x128xf32, #tpu.memory_space<vmem>>, vector<1x128xf32>
    tpu.vector_store %arg8[%c0_26, %c0_27], %56 {strides = array<i32>} : memref<1x128xf32, #tpu.memory_space<vmem>>, vector<1x128xf32>,
    return
  }
  func.func @transform_0(%arg0: i32) -> (i32, i32) {
    %c0_i32 = arith.constant 0 : i32
    %c0_i32_0 = arith.constant 0 : i32
    return %c0_i32, %arg0 : i32, i32
  }
  func.func @transform_1(%arg0: i32) -> (i32, i32) {
    %c0_i32 = arith.constant 0 : i32
    %c0_i32_0 = arith.constant 0 : i32
    %c0_i32_1 = arith.constant 0 : i32
    return %c0_i32, %c0_i32_0 : i32, i32
  }
  func.func @transform_2(%arg0: i32) -> (i32, i32) {
    %c0_i32 = arith.constant 0 : i32
    %c0_i32_0 = arith.constant 0 : i32
    %c0_i32_1 = arith.constant 0 : i32
    return %c0_i32, %c0_i32_0 : i32, i32
  }
  func.func @transform_3(%arg0: i32) -> (i32, i32) {
    %c0_i32 = arith.constant 0 : i32
    %c0_i32_0 = arith.constant 0 : i32
    %c0_i32_1 = arith.constant 0 : i32
    return %c0_i32, %c0_i32_0 : i32, i32
  }
  func.func @transform_4(%arg0: i32) -> (i32, i32) {
    %c0_i32 = arith.constant 0 : i32
    %c0_i32_0 = arith.constant 0 : i32
    %c0_i32_1 = arith.constant 0 : i32
    return %c0_i32, %c0_i32_0 : i32, i32
  }
  func.func @transform_5(%arg0: i32) -> (i32, i32) {
    %c0_i32 = arith.constant 0 : i32
    %c0_i32_0 = arith.constant 0 : i32
    %c0_i32_1 = arith.constant 0 : i32
    return %c0_i32, %c0_i32_0 : i32, i32
  }
  func.func @transform_6(%arg0: i32) -> (i32, i32) {
    %c0_i32 = arith.constant 0 : i32
    %c0_i32_0 = arith.constant 0 : i32
    %c0_i32_1 = arith.constant 0 : i32
    return %c0_i32, %c0_i32_0 : i32, i32
  }
  func.func @transform_7(%arg0: i32) -> (i32, i32) {
    %c0_i32 = arith.constant 0 : i32
    %c0_i32_0 = arith.constant 0 : i32
    return %c0_i32, %arg0 : i32, i32
  }
}

</mosaic_0001>

<bundles_post_ra>
// kernel: tpu_custom_call.1
= control target key start
LH: loop header
LB: loop body
LE: loop exit
PB: predicated region body
PF: predicated region fallthrough
CT: control target
= control target key end

     0   :  { %vm96_vm0 = vcmask 1045504   ;;  %vm47_vm1 = vcmask 179200   ;;  %v4311_v4 = vmov 0   ;;  %s5848_s0 = inlined_call_operand.vmem [shape: f32[22,128], index: 0, kind: input, shape index: {}]   ;;  %s5849_s1 = inlined_call_operand.vmem [shape: f32[128,22], index: 1, kind: input, shape index: {}]   ;;  %s5850_s2 = inlined_call_operand.vmem [shape: f32[10,128], index: 2, kind: input, shape index: {}]   ;;  %s5851_s3 = inlined_call_operand.vmem [shape: f32[512,4], index: 3, kind: input, shape index: {}]   ;;  %s5852_s4 = inlined_call_operand.vmem [shape: bf16[256,512], index: 4, kind: input, shape index: {}]   ;;  %s5853_s5 = inlined_call_operand.vmem [shape: f32[1,256], index: 5, kind: input, shape index: {}]   ;;  %s5854_s6 = inlined_call_operand.vmem [shape: f32[785,1], index: 6, kind: input, shape index: {}]   ;;  %s5855_s7 = inlined_call_operand.hbm [shape: f32[1,128], index: 7, kind: output, shape index: {}]  }
   0x1   :  { %v30_v0 = vld [vmem:[%s5848_s0 + $0x10] sm:$0x3f]  ;;  %v29_v1 = vld [vmem:[%s5848_s0 + $0x8] sm:$0xff]  ;;  %v31_v2 = vld [vmem:[%s5849_s1] sm:$0xff]  ;;  %3795 = vset.pattern.permute.xlu0 %v4311_v4  ;;  %3796 = vset.pattern.permute.xlu1 %v4311_v4 }
   0x2   :  { %3628 = vmatprep.subr.msk.mxu0 %vm96_vm0, %v30_v0  ;;  %v28_v3 = vld [vmem:[%s5848_s0] sm:$0xff]  ;;  %3634 = vmatprep.mubr.msk.f32.mxu0 %vm47_vm1, %v31_v2  ;;  %v32_v5 = vld [vmem:[%s5849_s1 + $0x8] sm:$0xff]  ;;  %v33_v6 = vld [vmem:[%s5849_s1 + $0x10] sm:$0xff] }
   0x3   :  { %3629 = vmatpush3.msk.msra.mxu0 %vm96_vm0, %v30_v0  ;;  %v263_v7 = vld [vmem:[%s5854_s6] sm:$0xff]  ;;  %v34_v8 = vld [vmem:[%s5849_s1 + $0x18] sm:$0xff]  ;;  %v264_v9 = vld [vmem:[%s5854_s6 + $0x8] sm:$0x3] }
   0x4   :  { %3630 = vmatprep.subr.mxu0 %v29_v1  ;;  %267 = vperm.xlu0 %3795, %v263_v7   ;;  %v35_v10 = vld [vmem:[%s5849_s1 + $0x20] sm:$0xff]  ;;  %v36_v11 = vld [vmem:[%s5849_s1 + $0x28] sm:$0xff]  ;;  %v37_v12 = vld [vmem:[%s5849_s1 + $0x30] sm:$0xff] }
   0x5   :  { %3631 = vmatpush3.msra.mxu0 %v29_v1  ;;  %v449_v13 = vld [vmem:[%s5854_s6 + $0x80] sm:$0xff]  ;;  %v38_v14 = vld [vmem:[%s5849_s1 + $0x38] sm:$0xff]  ;;  %v40_v17 = vld [vmem:[%s5849_s1 + $0x48] sm:$0xff] }
   0x6   :  { %3632 = vmatprep.subr.mxu0 %v28_v3  ;;  %v497_v15 = vld [vmem:[%s5854_s6 + $0x200] sm:$0xff]  ;;  %v41_v19 = vld [vmem:[%s5849_s1 + $0x50] sm:$0xff]  ;;  %v42_v20 = vld [vmem:[%s5849_s1 + $0x58] sm:$0xff] }
   0x7   :  { %3633 = vmatpush3.msra.mxu0 %v28_v3  ;;  %v39_v16 = vld [vmem:[%s5849_s1 + $0x40] sm:$0xff]  ;;  %v463_v21 = vld [vmem:[%s5854_s6 + $0xf0] sm:$0xff]  ;;  %v44_v23 = vld [vmem:[%s5849_s1 + $0x68] sm:$0xff] }
   0x8   :  { %3635 = vmatmul.mubr.msk.f32.vlgmr.msra.gmra.mxu0 %vm47_vm1, %v32_v5  ;;  %272 = vperm.xlu0 %3795, %v264_v9   ;;  %v481_v18 = vld [vmem:[%s5854_s6 + $0x180] sm:$0xff]  ;;  %v447_v24 = vld [vmem:[%s5854_s6 + $0x70] sm:$0xff]  ;;  %v46_v26 = vld [vmem:[%s5849_s1 + $0x78] sm:$0xff] }
   0x9   :  { %3637 = vmatprep.mubr.msk.f32.mxu0 %vm47_vm1, %v33_v6  ;;  %v43_v22 = vld [vmem:[%s5849_s1 + $0x60] sm:$0xff]  ;;  %v45_v25 = vld [vmem:[%s5849_s1 + $0x70] sm:$0xff] }
   0xa   :  { %v495_v27 = vld [vmem:[%s5854_s6 + $0x1f0] sm:$0xff] }
   0xc   :  { %3638 = vmatmul.mubr.msk.f32.gmra.mxu0 %vm47_vm1, %v34_v8  ;;  %571 = vperm.xlu0 %3795, %v449_v13  }
   0xd   :  { %3640 = vmatprep.mubr.msk.f32.mxu0 %vm47_vm1, %v35_v10 }
  0x10   :  { %3641 = vmatmul.mubr.msk.f32.gmra.mxu0 %vm47_vm1, %v36_v11  ;;  %811 = vperm.xlu0 %3795, %v497_v15  }
  0x11   :  { %3643 = vmatprep.mubr.msk.f32.mxu0 %vm47_vm1, %v37_v12 }
  0x14   :  { %3644 = vmatmul.mubr.msk.f32.gmra.mxu0 %vm47_vm1, %v38_v14  ;;  %731 = vperm.xlu0 %3795, %v481_v18  }
  0x15   :  { %3646 = vmatprep.mubr.msk.f32.mxu0 %vm47_vm1, %v39_v16 }
  0x18   :  { %3647 = vmatmul.mubr.msk.f32.gmra.mxu0 %vm47_vm1, %v40_v17  ;;  %641 = vperm.xlu0 %3795, %v463_v21  }
  0x19   :  { %3649 = vmatprep.mubr.msk.f32.mxu0 %vm47_vm1, %v41_v19 }
  0x1c   :  { %3650 = vmatmul.mubr.msk.f32.gmra.mxu0 %vm47_vm1, %v42_v20  ;;  %561 = vperm.xlu0 %3795, %v447_v24  }
  0x1d   :  { %3652 = vmatprep.mubr.msk.f32.mxu0 %vm47_vm1, %v43_v22 }
  0x20   :  { %3653 = vmatmul.mubr.msk.f32.gmra.mxu0 %vm47_vm1, %v44_v23 }
  0x21   :  { %3655 = vmatprep.mubr.msk.f32.mxu0 %vm47_vm1, %v45_v25 }
  0x22   :  { %12 = vsyncpa [#allocation3], 0  ;;  %801 = vperm.xlu0 %3795, %v495_v27   ;;  %v479_v28 = vld [vmem:[%s5854_s6 + $0x170] sm:$0xff]  ;;  %v461_v29 = vld [vmem:[%s5854_s6 + $0xe0] sm:$0xff]  ;;  %vm819_vm2 = vcmask 31744   ;;  %vm1012_vm3 = vcmask 1043456  }
  0x23   :  { %v445_v30 = vld [vmem:[%s5854_s6 + $0x60] sm:$0xff]  ;;  %v459_v33 = vld [vmem:[%s5854_s6 + $0xd0] sm:$0xff]  ;;  %v1912_v54 = vld [vmem:[%s5854_s6 + $0x308] sm:$0xff] }
  0x24   :  { %3656 = vmatmul.mubr.msk.f32.gmra.mxu0 %vm47_vm1, %v46_v26  ;;  %v493_v31 = vld [vmem:[%s5854_s6 + $0x1e0] sm:$0xff]  ;;  %v443_v34 = vld [vmem:[%s5854_s6 + $0x50] sm:$0xff]  ;;  %v466_v57 = vld [vmem:[%s5854_s6 + $0x108] sm:$0xff] }
  0x25   :  { %v477_v32 = vld [vmem:[%s5854_s6 + $0x160] sm:$0xff]  ;;  %v491_v35 = vld [vmem:[%s5854_s6 + $0x1d0] sm:$0xff]  ;;  %v1910_v58 = vld [vmem:[%s5854_s6 + $0x2f8] sm:$0xff] }
  0x26   :  { %721 = vperm.xlu0 %3795, %v479_v28   ;;  %v475_v36 = vld [vmem:[%s5854_s6 + $0x150] sm:$0xff]  ;;  %v457_v37 = vld [vmem:[%s5854_s6 + $0xc0] sm:$0xff]  ;;  %v450_v59 = vld [vmem:[%s5854_s6 + $0x88] sm:$0xff] }
  0x27   :  { %v441_v38 = vld [vmem:[%s5854_s6 + $0x40] sm:$0xff]  ;;  %v455_v41 = vld [vmem:[%s5854_s6 + $0xb0] sm:$0xff]  ;;  %v498_v61 = vld [vmem:[%s5854_s6 + $0x208] sm:$0xff] }
  0x28   :  { %v489_v39 = vld [vmem:[%s5854_s6 + $0x1c0] sm:$0xff]  ;;  %v439_v42 = vld [vmem:[%s5854_s6 + $0x30] sm:$0xff]  ;;  %v1908_v62 = vld [vmem:[%s5854_s6 + $0x2e8] sm:$0xff] }
  0x29   :  { %v473_v40 = vld [vmem:[%s5854_s6 + $0x140] sm:$0xff]  ;;  %v487_v43 = vld [vmem:[%s5854_s6 + $0x1b0] sm:$0xff]  ;;  %v482_v63 = vld [vmem:[%s5854_s6 + $0x188] sm:$0xff] }
  0x2a   :  { %631 = vperm.xlu0 %3795, %v461_v29   ;;  %v471_v44 = vld [vmem:[%s5854_s6 + $0x130] sm:$0xff]  ;;  %v453_v45 = vld [vmem:[%s5854_s6 + $0xa0] sm:$0xff]  ;;  %v464_v1 = vld [vmem:[%s5854_s6 + $0xf8] sm:$0xff] }
  0x2b   :  { %v437_v46 = vld [vmem:[%s5854_s6 + $0x20] sm:$0xff]  ;;  %v451_v49 = vld [vmem:[%s5854_s6 + $0x90] sm:$0xff]  ;;  %v1906_v2 = vld [vmem:[%s5854_s6 + $0x2d8] sm:$0xff] }
  0x2c   :  { %v485_v47 = vld [vmem:[%s5854_s6 + $0x1a0] sm:$0xff]  ;;  %v435_v50 = vld [vmem:[%s5854_s6 + $0x10] sm:$0xff]  ;;  %v448_v3 = vld [vmem:[%s5854_s6 + $0x78] sm:$0xff] }
  0x2d   :  { %v469_v48 = vld [vmem:[%s5854_s6 + $0x120] sm:$0xff]  ;;  %v483_v51 = vld [vmem:[%s5854_s6 + $0x190] sm:$0xff]  ;;  %v496_v5 = vld [vmem:[%s5854_s6 + $0x1f8] sm:$0xff] }
  0x2e   :  { %551 = vperm.xlu0 %3795, %v445_v30   ;;  %v261_v52 = vld [vmem:[%s5850_s2] sm:$0xff]  ;;  %v467_v53 = vld [vmem:[%s5854_s6 + $0x110] sm:$0xff]  ;;  %v1904_v6 = vld [vmem:[%s5854_s6 + $0x2c8] sm:$0xff] }
  0x2f   :  { %3690 = vmatprep.mubr.f32.mxu1 %v261_v52  ;;  %v1911_v55 = vld [vmem:[%s5854_s6 + $0x300] sm:$0xff]  ;;  %v1909_v60 = vld [vmem:[%s5854_s6 + $0x2f0] sm:$0xff]  ;;  %v480_v7 = vld [vmem:[%s5854_s6 + $0x178] sm:$0xff] }
  0x30   :  { %v465_v56 = vld [vmem:[%s5854_s6 + $0x100] sm:$0xff]  ;;  %v1905_v4 = vld [vmem:[%s5854_s6 + $0x2d0] sm:$0xff]  ;;  %v462_v9 = vld [vmem:[%s5854_s6 + $0xe8] sm:$0xff] }
  0x31   :  { %651 = vperm.xlu1 %3796, %v465_v56   ;;  %v1907_v0 = vld [vmem:[%s5854_s6 + $0x2e0] sm:$0xff]  ;;  %v1902_v10 = vld [vmem:[%s5854_s6 + $0x2b8] sm:$0xff]  ;;  %v446_v11 = vld [vmem:[%s5854_s6 + $0x68] sm:$0xff] }
  0x32   :  { %791 = vperm.xlu0 %3795, %v493_v31   ;;  %v1903_v8 = vld [vmem:[%s5854_s6 + $0x2c0] sm:$0xff]  ;;  %v1901_v12 = vld [vmem:[%s5854_s6 + $0x2b0] sm:$0xff]  ;;  %v494_v13 = vld [vmem:[%s5854_s6 + $0x1e8] sm:$0xff] }
  0x33   :  { %v1900_v14 = vld [vmem:[%s5854_s6 + $0x2a8] sm:$0xff]  ;;  %v1899_v16 = vld [vmem:[%s5854_s6 + $0x2a0] sm:$0xff]  ;;  %v460_v17 = vld [vmem:[%s5854_s6 + $0xd8] sm:$0xff] }
  0x34   :  { %v478_v15 = vld [vmem:[%s5854_s6 + $0x168] sm:$0xff]  ;;  %v1898_v18 = vld [vmem:[%s5854_s6 + $0x298] sm:$0xff]  ;;  %v1897_v20 = vld [vmem:[%s5854_s6 + $0x290] sm:$0xff] }
  0x35   :  { %656 = vperm.xlu1 %3796, %v466_v57   ;;  %v444_v19 = vld [vmem:[%s5854_s6 + $0x58] sm:$0xff]  ;;  %v2908_v23 = vld [vmem:[%s5854_s6 + $0x310] sm:$0x1]  ;;  %v458_v29 = vld [vmem:[%s5854_s6 + $0xc8] sm:$0xff] }
  0x36   :  { %711 = vperm.xlu0 %3795, %v477_v32   ;;  %v492_v21 = vld [vmem:[%s5854_s6 + $0x1d8] sm:$0xff]  ;;  %v442_v32 = vld [vmem:[%s5854_s6 + $0x48] sm:$0xff] }
  0x37   :  { %v476_v25 = vld [vmem:[%s5854_s6 + $0x158] sm:$0xff] }
  0x38   :  { %v472_v52 = vld [vmem:[%s5854_s6 + $0x138] sm:$0xff] }
  0x39   :  { %576 = vperm.xlu1 %3796, %v450_v59  }
  0x3a   :  { %621 = vperm.xlu0 %3795, %v459_v33  }
  0x3d   :  { %816 = vperm.xlu1 %3796, %v498_v61   ;;  %v486_v61 = vld [vmem:[%s5854_s6 + $0x1a8] sm:$0xff] }
  0x3e   :  { %541 = vperm.xlu0 %3795, %v443_v34  }
  0x41   :  { %736 = vperm.xlu1 %3796, %v482_v63  }
  0x42   :  { %781 = vperm.xlu0 %3795, %v491_v35   ;;  %v490_v35 = vld [vmem:[%s5854_s6 + $0x1c8] sm:$0xff] }
  0x45   :  { %646 = vperm.xlu1 %3796, %v464_v1  }
  0x46   :  { %701 = vperm.xlu0 %3795, %v475_v36  }
  0x49   :  { %566 = vperm.xlu1 %3796, %v448_v3  }
  0x4a   :  { %611 = vperm.xlu0 %3795, %v457_v37  }
  0x4d   :  { %806 = vperm.xlu1 %3796, %v496_v5   ;;  %v470_v5 = vld [vmem:[%s5854_s6 + $0x128] sm:$0xff] }
  0x4e   :  { %531 = vperm.xlu0 %3795, %v441_v38   ;;  %v474_v38 = vld [vmem:[%s5854_s6 + $0x148] sm:$0xff] }
  0x51   :  { %726 = vperm.xlu1 %3796, %v480_v7   ;;  %v436_v7 = vld [vmem:[%s5854_s6 + $0x18] sm:$0xff] }
  0x52   :  { %771 = vperm.xlu0 %3795, %v489_v39  }
  0x55   :  { %636 = vperm.xlu1 %3796, %v462_v9   ;;  %v468_v9 = vld [vmem:[%s5854_s6 + $0x118] sm:$0xff] }
  0x56   :  { %691 = vperm.xlu0 %3795, %v473_v40  }
  0x59   :  { %556 = vperm.xlu1 %3796, %v446_v11   ;;  %v1895_v11 = vld [vmem:[%s5854_s6 + $0x280] sm:$0xff] }
  0x5a   :  { %601 = vperm.xlu0 %3795, %v455_v41   ;;  %v456_v41 = vld [vmem:[%s5854_s6 + $0xb8] sm:$0xff] }
  0x5d   :  { %796 = vperm.xlu1 %3796, %v494_v13   ;;  %v1893_v13 = vld [vmem:[%s5854_s6 + $0x270] sm:$0xff] }
  0x5e   :  { %521 = vperm.xlu0 %3795, %v439_v42  }
  0x61   :  { %716 = vperm.xlu1 %3796, %v478_v15   ;;  %v1891_v15 = vld [vmem:[%s5854_s6 + $0x260] sm:$0xff] }
  0x62   :  { %761 = vperm.xlu0 %3795, %v487_v43  }
  0x65   :  { %626 = vperm.xlu1 %3796, %v460_v17   ;;  %v401_v17 = vld [vmem:[%s5851_s3 + $0xf0] sm:$0xff] }
  0x66   :  { %681 = vperm.xlu0 %3795, %v471_v44   ;;  %v440_v44 = vld [vmem:[%s5854_s6 + $0x38] sm:$0xff] }
  0x69   :  { %546 = vperm.xlu1 %3796, %v444_v19   ;;  %v1889_v19 = vld [vmem:[%s5854_s6 + $0x250] sm:$0xff] }
  0x6a   :  { %591 = vperm.xlu0 %3795, %v453_v45  }
  0x6d   :  { %786 = vperm.xlu1 %3796, %v492_v21   ;;  %v1887_v21 = vld [vmem:[%s5854_s6 + $0x240] sm:$0xff] }
  0x6e   :  { %511 = vperm.xlu0 %3795, %v437_v46  }
  0x71   :  { %706 = vperm.xlu1 %3796, %v476_v25   ;;  %v1883_v25 = vld [vmem:[%s5854_s6 + $0x220] sm:$0xff] }
  0x72   :  { %751 = vperm.xlu0 %3795, %v485_v47  }
  0x75   :  { %616 = vperm.xlu1 %3796, %v458_v29  }
  0x76   :  { %671 = vperm.xlu0 %3795, %v469_v48  }
  0x79   :  { %536 = vperm.xlu1 %3796, %v442_v32  }
  0x7a   :  { %581 = vperm.xlu0 %3795, %v451_v49   ;;  %v488_v49 = vld [vmem:[%s5854_s6 + $0x1b8] sm:$0xff] }
  0x7d   :  { %776 = vperm.xlu1 %3796, %v490_v35  }
  0x7e   :  { %501 = vperm.xlu0 %3795, %v435_v50  }
  0x7f   :  { %v4636_v27 = vpop.permute.xlu0 %267 }
  0x81   :  { %696 = vperm.xlu1 %3796, %v474_v38  }
  0x82   :  { %741 = vperm.xlu0 %3795, %v483_v51  }
  0x83   :  { %v273_v29 = vpop.permute.xlu0 %272 }
  0x85   :  { %606 = vperm.xlu1 %3796, %v456_v41  }
  0x86   :  { %661 = vperm.xlu0 %3795, %v467_v53  }
  0x89   :  { %526 = vperm.xlu1 %3796, %v440_v44  }
  0x8a   :  { %2070 = vperm.xlu0 %3795, %v1912_v54  }
  0x8d   :  { %766 = vperm.xlu1 %3796, %v488_v49   ;;  %v402_v49 = vld [vmem:[%s5851_s3 + $0xf8] sm:$0xff] }
  0x8e   :  { %2065 = vperm.xlu0 %3795, %v1911_v55   ;;  %v454_v55 = vld [vmem:[%s5854_s6 + $0xa8] sm:$0xff] }
  0x91   :  { %686 = vperm.xlu1 %3796, %v472_v52   ;;  %v374_v52 = vld [vmem:[%s5851_s3 + $0x18] sm:$0xff] }
  0x92   :  { %2060 = vperm.xlu0 %3795, %v1910_v58   ;;  %v438_v58 = vld [vmem:[%s5854_s6 + $0x28] sm:$0xff] }
  0x95   :  { %596 = vperm.xlu1 %3796, %v454_v55   ;;  %v405_v55 = vld [vmem:[%s5851_s3 + $0x110] sm:$0xff] }
  0x96   :  { %2055 = vperm.xlu0 %3795, %v1909_v60  }
  0x99   :  { %516 = vperm.xlu1 %3796, %v438_v58   ;;  %v406_v58 = vld [vmem:[%s5851_s3 + $0x118] sm:$0xff] }
  0x9a   :  { %2050 = vperm.xlu0 %3795, %v1908_v62  }
  0x9d   :  { %756 = vperm.xlu1 %3796, %v486_v61   ;;  %v378_v61 = vld [vmem:[%s5851_s3 + $0x38] sm:$0xff] }
  0x9e   :  { %2045 = vperm.xlu0 %3795, %v1907_v0  }
  0xa1   :  { %676 = vperm.xlu1 %3796, %v470_v5   ;;  %v411_v5 = vld [vmem:[%s5851_s3 + $0x140] sm:$0xff] }
  0xa2   :  { %2040 = vperm.xlu0 %3795, %v1906_v2  }
  0xa6   :  { %2035 = vperm.xlu0 %3795, %v1905_v4   ;;  %v262_v4 = vld [vmem:[%s5850_s2 + $0x8] sm:$0x3] }
  0xaa   :  { %2030 = vperm.xlu0 %3795, %v1904_v6   ;;  %v452_v6 = vld [vmem:[%s5854_s6 + $0x98] sm:$0xff] }
  0xab   :  { %586 = vperm.xlu1 %3796, %v452_v6   ;;  %v4848_v6 = vpop.permute.xlu0 %571 }
  0xae   :  { %2025 = vperm.xlu0 %3795, %v1903_v8   ;;  %v484_v8 = vld [vmem:[%s5854_s6 + $0x198] sm:$0xff] }
  0xaf   :  { %506 = vperm.xlu1 %3796, %v436_v7  }
  0xb2   :  { %2020 = vperm.xlu0 %3795, %v1902_v10   ;;  %v1896_v10 = vld [vmem:[%s5854_s6 + $0x288] sm:$0xff] }
  0xb3   :  { %746 = vperm.xlu1 %3796, %v484_v8   ;;  %v382_v8 = vld [vmem:[%s5851_s3 + $0x58] sm:$0xff] }
  0xb6   :  { %2015 = vperm.xlu0 %3795, %v1901_v12   ;;  %v1894_v12 = vld [vmem:[%s5854_s6 + $0x278] sm:$0xff] }
  0xb7   :  { %666 = vperm.xlu1 %3796, %v468_v9   ;;  %v412_v9 = vld [vmem:[%s5851_s3 + $0x148] sm:$0xff] }
  0xba   :  { %2010 = vperm.xlu0 %3795, %v1900_v14   ;;  %v1892_v14 = vld [vmem:[%s5854_s6 + $0x268] sm:$0xff] }
  0xbb   :  { %1990 = vperm.xlu1 %3796, %v1896_v10   ;;  %v383_v10 = vld [vmem:[%s5851_s3 + $0x60] sm:$0xff] }
  0xbe   :  { %2005 = vperm.xlu0 %3795, %v1899_v16   ;;  %v371_v16 = vld [vmem:[%s5851_s3] sm:$0xff] }
  0xbf   :  { %1985 = vperm.xlu1 %3796, %v1895_v11   ;;  %3695 = vmatprep.mubr.msk.f32.mxu0 %vm819_vm2, %v371_v16  ;;  %v413_v11 = vld [vmem:[%s5851_s3 + $0x150] sm:$0xff]  ;;  %v4882_v16 = vpop.permute.xlu0 %811 }
  0xc0   :  { %5876 = vst [vmem:[#allocation7_spill] sm:$0xff] %v4882_v16 }
  0xc2   :  { %2000 = vperm.xlu0 %3795, %v1898_v18   ;;  %v1890_v18 = vld [vmem:[%s5854_s6 + $0x258] sm:$0xff] }
  0xc3   :  { %1980 = vperm.xlu1 %3796, %v1894_v12   ;;  %v384_v12 = vld [vmem:[%s5851_s3 + $0x68] sm:$0xff] }
  0xc6   :  { %1995 = vperm.xlu0 %3795, %v1897_v20   ;;  %v1888_v20 = vld [vmem:[%s5854_s6 + $0x248] sm:$0xff] }
  0xc7   :  { %1975 = vperm.xlu1 %3796, %v1893_v13   ;;  %v414_v13 = vld [vmem:[%s5851_s3 + $0x158] sm:$0xff] }
  0xc8   :  { %v4624_v22 = vpop.f32.mrf.mxu0 }
  0xc9   :  { %v246_v2 = vmax.f32 %v4624_v22, 0.0  ;;  %v1886_v22 = vld [vmem:[%s5854_s6 + $0x238] sm:$0xff] }
  0xca   :  { %v4629_v24 = vpop.f32.mrf.mxu0  ;;  %2911 = vperm.xlu0 %3795, %v2908_v23   ;;  %v1885_v23 = vld [vmem:[%s5854_s6 + $0x230] sm:$0xff] }
  0xcb   :  { %v245_v3 = vmax.f32 %v4629_v24, 0.0  ;;  %1970 = vperm.xlu1 %3796, %v1892_v14   ;;  %v1884_v24 = vld [vmem:[%s5854_s6 + $0x228] sm:$0xff]  ;;  %v385_v14 = vld [vmem:[%s5851_s3 + $0x70] sm:$0xff] }
  0xcc   :  { %v4634_v26 = vpop.f32.mrf.mxu0 }
  0xcd   :  { %v248_v0 = vmax.f32 %v4634_v26, 0.0  ;;  %v1882_v26 = vld [vmem:[%s5854_s6 + $0x218] sm:$0xff] }
  0xce   :  { %v4638_v28 = vpop.f32.mrf.mxu0 }
  0xcf   :  { %v247_v1 = vmax.f32 %v4638_v28, 0.0  ;;  %1965 = vperm.xlu1 %3796, %v1891_v15   ;;  %v1881_v28 = vld [vmem:[%s5854_s6 + $0x210] sm:$0xff]  ;;  %v415_v15 = vld [vmem:[%s5851_s3 + $0x160] sm:$0xff] }
  0xd0   :  { %v4643_v30 = vpop.f32.mrf.mxu0 }
  0xd1   :  { %v250_v62 = vmax.f32 %v4643_v30, 0.0 }
  0xd2   :  { %v4645_v31 = vpop.f32.mrf.mxu0 }
  0xd3   :  { %v249_v63 = vmax.f32 %v4645_v31, 0.0  ;;  %1960 = vperm.xlu1 %3796, %v1890_v18   ;;  %v386_v18 = vld [vmem:[%s5851_s3 + $0x78] sm:$0xff] }
  0xd4   :  { %v3645_v33 = vpop.f32.mrf.mxu0 }
  0xd5   :  { %v252_v59 = vmax.f32 %v3645_v33, 0.0 }
  0xd6   :  { %v196_v34 = vpop.f32.mrf.mxu0 }
  0xd7   :  { %v251_v60 = vmax.f32 %v196_v34, 0.0  ;;  %1955 = vperm.xlu1 %3796, %v1889_v19   ;;  %v416_v19 = vld [vmem:[%s5851_s3 + $0x168] sm:$0xff] }
  0xd8   :  { %v3648_v36 = vpop.f32.mrf.mxu0 }
  0xd9   :  { %v254_v56 = vmax.f32 %v3648_v36, 0.0 }
  0xda   :  { %v206_v37 = vpop.f32.mrf.mxu0 }
  0xdb   :  { %v253_v57 = vmax.f32 %v206_v37, 0.0  ;;  %1950 = vperm.xlu1 %3796, %v1888_v20   ;;  %v387_v20 = vld [vmem:[%s5851_s3 + $0x80] sm:$0xff] }
  0xdc   :  { %v3651_v39 = vpop.f32.mrf.mxu0 }
  0xdd   :  { %v256_v53 = vmax.f32 %v3651_v39, 0.0 }
  0xde   :  { %v216_v40 = vpop.f32.mrf.mxu0 }
  0xdf   :  { %v255_v54 = vmax.f32 %v216_v40, 0.0  ;;  %1945 = vperm.xlu1 %3796, %v1887_v21   ;;  %v366_v40 = vlaneseq  ;;  %v417_v21 = vld [vmem:[%s5851_s3 + $0x170] sm:$0xff] }
  0xe0   :  { %v3654_v42 = vpop.f32.mrf.mxu0 }
  0xe1   :  { %v258_v50 = vmax.f32 %v3654_v42, 0.0  ;;  %v4758_v41 = vshrl.u32 %v366_v40, 7 }
  0xe2   :  { %v226_v43 = vpop.f32.mrf.mxu0 }
  0xe3   :  { %v257_v51 = vmax.f32 %v226_v43, 0.0  ;;  %1940 = vperm.xlu1 %3796, %v1886_v22   ;;  %5874 = vst [vmem:[#allocation5_spill] sm:$0xff] %v4758_v41  ;;  %v5856_v43 = vsub.s32 0, %v4758_v41  ;;  %v4904_v22 = vpop.permute.xlu0 %731 }
  0xe4   :  { %v3657_v45 = vpop.f32.mrf.mxu0 }
  0xe5   :  { %v260_v46 = vmax.f32 %v3657_v45, 0.0 }
  0xe6   :  { %v236_v47 = vpop.f32.mrf.mxu0 }
  0xe7   :  { %v259_v48 = vmax.f32 %v236_v47, 0.0  ;;  %3658 = vmatprep.subr.mxu1 %v260_v46  ;;  %1935 = vperm.xlu1 %3796, %v1885_v23  }
  0xe8   :  { %3659 = vmatpush3.msra.mxu1 %v260_v46 }
  0xe9   :  { %3660 = vmatprep.subr.mxu1 %v259_v48 }
  0xea   :  { %3661 = vmatpush3.msra.mxu1 %v259_v48  ;;  %v372_v48 = vld [vmem:[%s5851_s3 + $0x8] sm:$0xff] }
  0xeb   :  { %3662 = vmatprep.subr.mxu1 %v258_v50  ;;  %1930 = vperm.xlu1 %3796, %v1884_v24   ;;  %v388_v24 = vld [vmem:[%s5851_s3 + $0x88] sm:$0xff] }
  0xec   :  { %3663 = vmatpush3.msra.mxu1 %v258_v50  ;;  %v373_v50 = vld [vmem:[%s5851_s3 + $0x10] sm:$0xff] }
  0xed   :  { %3664 = vmatprep.subr.mxu1 %v257_v51 }
  0xee   :  { %3665 = vmatpush3.msra.mxu1 %v257_v51  ;;  %v403_v51 = vld [vmem:[%s5851_s3 + $0x100] sm:$0xff] }
  0xef   :  { %3666 = vmatprep.subr.mxu1 %v256_v53  ;;  %1925 = vperm.xlu1 %3796, %v1883_v25   ;;  %v418_v25 = vld [vmem:[%s5851_s3 + $0x178] sm:$0xff] }
  0xf0   :  { %3667 = vmatpush3.msra.mxu1 %v256_v53  ;;  %v404_v53 = vld [vmem:[%s5851_s3 + $0x108] sm:$0xff] }
  0xf1   :  { %3668 = vmatprep.subr.mxu1 %v255_v54 }
  0xf2   :  { %3669 = vmatpush3.msra.mxu1 %v255_v54  ;;  %v375_v54 = vld [vmem:[%s5851_s3 + $0x20] sm:$0xff] }
  0xf3   :  { %3670 = vmatprep.subr.mxu1 %v254_v56  ;;  %1920 = vperm.xlu1 %3796, %v1882_v26   ;;  %v389_v26 = vld [vmem:[%s5851_s3 + $0x90] sm:$0xff] }
  0xf4   :  { %3671 = vmatpush3.msra.mxu1 %v254_v56  ;;  %v4796_v56 = vpop.permute.xlu1 %651 }
  0xf5   :  { %3672 = vmatprep.subr.mxu1 %v253_v57 }
  0xf6   :  { %3673 = vmatpush3.msra.mxu1 %v253_v57  ;;  %v376_v57 = vld [vmem:[%s5851_s3 + $0x28] sm:$0xff] }
  0xf7   :  { %3674 = vmatprep.subr.mxu1 %v252_v59  ;;  %1915 = vperm.xlu1 %3796, %v1881_v28   ;;  %v419_v28 = vld [vmem:[%s5851_s3 + $0x180] sm:$0xff] }
  0xf8   :  { %3675 = vmatpush3.msra.mxu1 %v252_v59  ;;  %v377_v59 = vld [vmem:[%s5851_s3 + $0x30] sm:$0xff] }
  0xf9   :  { %3676 = vmatprep.subr.mxu1 %v251_v60 }
  0xfa   :  { %3677 = vmatpush3.msra.mxu1 %v251_v60  ;;  %v407_v60 = vld [vmem:[%s5851_s3 + $0x120] sm:$0xff] }
  0xfb   :  { %3678 = vmatprep.subr.mxu1 %v250_v62 }
  0xfc   :  { %3679 = vmatpush3.msra.mxu1 %v250_v62  ;;  %v408_v62 = vld [vmem:[%s5851_s3 + $0x128] sm:$0xff] }
  0xfd   :  { %3680 = vmatprep.subr.mxu1 %v249_v63 }
  0xfe   :  { %3681 = vmatpush3.msra.mxu1 %v249_v63  ;;  %v379_v63 = vld [vmem:[%s5851_s3 + $0x40] sm:$0xff] }
  0xff   :  { %3682 = vmatprep.subr.mxu1 %v248_v0 }
 0x100   :  { %3683 = vmatpush3.msra.mxu1 %v248_v0  ;;  %v409_v0 = vld [vmem:[%s5851_s3 + $0x130] sm:$0xff] }
 0x101   :  { %3684 = vmatprep.subr.mxu1 %v247_v1 }
 0x102   :  { %3685 = vmatpush3.msra.mxu1 %v247_v1  ;;  %v4828_v1 = vpop.permute.xlu1 %656 }
 0x103   :  { %3686 = vmatprep.subr.mxu1 %v246_v2 }
 0x104   :  { %3687 = vmatpush3.msra.mxu1 %v246_v2  ;;  %v380_v2 = vld [vmem:[%s5851_s3 + $0x48] sm:$0xff] }
 0x105   :  { %3688 = vmatprep.subr.mxu1 %v245_v3 }
 0x106   :  { %3689 = vmatpush3.msra.mxu1 %v245_v3  ;;  %v410_v3 = vld [vmem:[%s5851_s3 + $0x138] sm:$0xff]  ;;  %v4850_v7 = vpop.permute.xlu1 %576 }
 0x107   :  { %3691 = vmatmul.mubr.f32.vlgmr.msra.gmra.mxu1 %v262_v4  ;;  %v381_v4 = vld [vmem:[%s5851_s3 + $0x50] sm:$0xff] }
 0x108   :  { %3740 = vmatprep.mubr.msk.f32.mxu1 %vm819_vm2, %v401_v17 }
 0x10a   :  { %v4884_v17 = vpop.permute.xlu1 %816 }
 0x10b   :  { %5877 = vst [vmem:[#allocation8_spill] sm:$0xff] %v4884_v17 }
 0x10e   :  { %v4906_v23 = vpop.permute.xlu1 %736 }
 0x1c7   :  { %v3692_v30 = vpop.f32.mrf.mxu1 }
 0x1c8   :  { %v347_v31 = vadd.f32 %v3692_v30, %v273_v29  ;;  %v390_v29 = vld [vmem:[%s5851_s3 + $0x98] sm:$0xff]  ;;  %v420_v30 = vld [vmem:[%s5851_s3 + $0x188] sm:$0xff] }
 0x1c9   :  { %v341_v32 = vpop.f32.mrf.mxu1 }
 0x1ca   :  { %v3040_v33 = vmul.f32 -1.442695, %v347_v31  ;;  %v342_v34 = vadd.f32 %v341_v32, %v4636_v27  ;;  %v391_v31 = vld [vmem:[%s5851_s3 + $0xa0] sm:$0xff]  ;;  %v421_v32 = vld [vmem:[%s5851_s3 + $0x190] sm:$0xff] }
 0x1cc   :  { %3893 = vpow2.f32 %v3040_v33  ;;  %v3039_v35 = vmul.f32 -1.442695, %v342_v34  ;;  %v4938_v33 = vpop.permute.xlu0 %641  ;;  %v4940_v34 = vpop.permute.xlu1 %646 }
 0x1cd   :  { %5878 = vst [vmem:[#allocation9_spill] sm:$0xff] %v4938_v33  ;;  %5879 = vst [vmem:[#allocation10_spill] sm:$0xff] %v4940_v34 }
 0x1ce   :  { %3895 = vpow2.f32 %v3039_v35  ;;  %v392_v35 = vld [vmem:[%s5851_s3 + $0xa8] sm:$0xff] }
 0x1d0   :  { %v4962_v40 = vpop.permute.xlu1 %566 }
 0x1d9   :  { %v3894_v36 = vpop.eup %3893 }
 0x1da   :  { %v357_v37 = vadd.f32 1.0, %v3894_v36  ;;  %v422_v36 = vld [vmem:[%s5851_s3 + $0x198] sm:$0xff] }
 0x1db   :  { %v3896_v38 = vpop.eup %3895 }
 0x1dc   :  { %v356_v39 = vadd.f32 1.0, %v3896_v38  ;;  %3897 = vrcp.f32 %v357_v37  ;;  %v393_v37 = vld [vmem:[%s5851_s3 + $0xb0] sm:$0xff]  ;;  %v423_v38 = vld [vmem:[%s5851_s3 + $0x1a0] sm:$0xff] }
 0x1de   :  { %3899 = vrcp.f32 %v356_v39  ;;  %v4960_v39 = vpop.permute.xlu0 %561 }
 0x1e9   :  { %v4760_v42 = vpop.eup %3897 }
 0x1ea   :  { %5875 = vst [vmem:[#allocation6_spill] sm:$0xff] %v4760_v42  ;;  %v369_v27 = vrot.slane %v4760_v42, %v5856_v43 }
 0x1eb   :  { %v3900_v44 = vpop.eup %3899 }
 0x1ec   :  { %v363_v45 = vrot.slane %v3900_v44, 4 }
 0x1ee   :  { %v365_v46 = vsub.f32 %v3900_v44, %v363_v45  ;;  %v394_v44 = vld [vmem:[%s5851_s3 + $0xb8] sm:$0xff]  ;;  %v424_v45 = vld [vmem:[%s5851_s3 + $0x1a8] sm:$0xff] }
 0x1f0   :  { %v370_v47 = vmul.f32 %v369_v27, %v365_v46  ;;  %v395_v46 = vld [vmem:[%s5851_s3 + $0xc0] sm:$0xff]  ;;  %v425_v27 = vld [vmem:[%s5851_s3 + $0x1b0] sm:$0xff] }
 0x1f2   :  { %3693 = vmatprep.subr.msk.mxu0 %vm1012_vm3, %v370_v47  ;;  %3791 = vmatprep.subr.msk.mxu1 %vm1012_vm3, %v370_v47 }
 0x1f3   :  { %3694 = vmatpush3.msk.msra.mxu0 %vm1012_vm3, %v370_v47  ;;  %3792 = vmatpush3.msk.msra.mxu1 %vm1012_vm3, %v370_v47  ;;  %v396_v47 = vld [vmem:[%s5851_s3 + $0xc8] sm:$0xff] }
 0x1f4   :  { %3696 = vmatmul.mubr.msk.f32.vlgmr.msra.gmra.mxu0 %vm819_vm2, %v372_v48  ;;  %3741 = vmatmul.mubr.msk.f32.vlgmr.msra.gmra.mxu1 %vm819_vm2, %v402_v49  ;;  %v426_v48 = vld [vmem:[%s5851_s3 + $0x1b8] sm:$0xff]  ;;  %v397_v49 = vld [vmem:[%s5851_s3 + $0xd0] sm:$0xff] }
 0x1f5   :  { %3698 = vmatprep.mubr.msk.f32.mxu0 %vm819_vm2, %v373_v50  ;;  %3743 = vmatprep.mubr.msk.f32.mxu1 %vm819_vm2, %v403_v51  ;;  %v427_v50 = vld [vmem:[%s5851_s3 + $0x1c0] sm:$0xff]  ;;  %v4994_v51 = vpop.permute.xlu0 %801 }
 0x1f6   :  { %5880 = vst [vmem:[#allocation11_spill] sm:$0xff] %v4994_v51 }
 0x1f8   :  { %3699 = vmatmul.mubr.msk.f32.gmra.mxu0 %vm819_vm2, %v374_v52  ;;  %3744 = vmatmul.mubr.msk.f32.gmra.mxu1 %vm819_vm2, %v404_v53  ;;  %v4996_v52 = vpop.permute.xlu1 %806  ;;  %v398_v53 = vld [vmem:[%s5851_s3 + $0xd8] sm:$0xff] }
 0x1f9   :  { %3701 = vmatprep.mubr.msk.f32.mxu0 %vm819_vm2, %v375_v54  ;;  %3746 = vmatprep.mubr.msk.f32.mxu1 %vm819_vm2, %v405_v55  ;;  %5881 = vst [vmem:[#allocation12_spill] sm:$0xff] %v4996_v52  ;;  %v428_v54 = vld [vmem:[%s5851_s3 + $0x1c8] sm:$0xff]  ;;  %v399_v55 = vld [vmem:[%s5851_s3 + $0xe0] sm:$0xff] }
 0x1fc   :  { %3702 = vmatmul.mubr.msk.f32.gmra.mxu0 %vm819_vm2, %v376_v57  ;;  %3747 = vmatmul.mubr.msk.f32.gmra.mxu1 %vm819_vm2, %v406_v58  ;;  %v429_v57 = vld [vmem:[%s5851_s3 + $0x1d0] sm:$0xff]  ;;  %v5016_v58 = vpop.permute.xlu0 %721 }
 0x1fd   :  { %3704 = vmatprep.mubr.msk.f32.mxu0 %vm819_vm2, %v377_v59  ;;  %3749 = vmatprep.mubr.msk.f32.mxu1 %vm819_vm2, %v407_v60  ;;  %v5018_v59 = vpop.permute.xlu1 %726  ;;  %v400_v60 = vld [vmem:[%s5851_s3 + $0xe8] sm:$0xff] }
 0x200   :  { %3705 = vmatmul.mubr.msk.f32.gmra.mxu0 %vm819_vm2, %v378_v61  ;;  %3750 = vmatmul.mubr.msk.f32.gmra.mxu1 %vm819_vm2, %v408_v62  ;;  %v430_v61 = vld [vmem:[%s5851_s3 + $0x1d8] sm:$0xff]  ;;  %v431_v62 = vld [vmem:[%s5851_s3 + $0x1e0] sm:$0xff] }
 0x201   :  { %3707 = vmatprep.mubr.msk.f32.mxu0 %vm819_vm2, %v379_v63  ;;  %3752 = vmatprep.mubr.msk.f32.mxu1 %vm819_vm2, %v409_v0  ;;  %v432_v63 = vld [vmem:[%s5851_s3 + $0x1e8] sm:$0xff]  ;;  %v433_v0 = vld [vmem:[%s5851_s3 + $0x1f0] sm:$0xff] }
 0x204   :  { %3708 = vmatmul.mubr.msk.f32.gmra.mxu0 %vm819_vm2, %v380_v2  ;;  %3753 = vmatmul.mubr.msk.f32.gmra.mxu1 %vm819_vm2, %v410_v3  ;;  %v5040_v2 = vpop.permute.xlu0 %631  ;;  %v5042_v3 = vpop.permute.xlu1 %636 }
 0x205   :  { %3710 = vmatprep.mubr.msk.f32.mxu0 %vm819_vm2, %v381_v4  ;;  %3755 = vmatprep.mubr.msk.f32.mxu1 %vm819_vm2, %v411_v5  ;;  %5882 = vst [vmem:[#allocation13_spill] sm:$0xff] %v5040_v2  ;;  %5883 = vst [vmem:[#allocation14_spill] sm:$0xff] %v5042_v3  ;;  %v434_v4 = vld [vmem:[%s5851_s3 + $0x1f8] sm:$0xff] }
 0x208   :  { %3711 = vmatmul.mubr.msk.f32.gmra.mxu0 %vm819_vm2, %v382_v8  ;;  %3756 = vmatmul.mubr.msk.f32.gmra.mxu1 %vm819_vm2, %v412_v9  ;;  %v5050_v5 = vpop.permute.xlu0 %551  ;;  %v5052_v8 = vpop.permute.xlu1 %556 }
 0x209   :  { %3713 = vmatprep.mubr.msk.f32.mxu0 %vm819_vm2, %v383_v10  ;;  %3758 = vmatprep.mubr.msk.f32.mxu1 %vm819_vm2, %v413_v11 }
 0x20c   :  { %3714 = vmatmul.mubr.msk.f32.gmra.mxu0 %vm819_vm2, %v384_v12  ;;  %3759 = vmatmul.mubr.msk.f32.gmra.mxu1 %vm819_vm2, %v414_v13  ;;  %v5054_v9 = vpop.permute.xlu0 %791  ;;  %v5056_v10 = vpop.permute.xlu1 %796 }
 0x20d   :  { %3716 = vmatprep.mubr.msk.f32.mxu0 %vm819_vm2, %v385_v14  ;;  %3761 = vmatprep.mubr.msk.f32.mxu1 %vm819_vm2, %v415_v15  ;;  %5884 = vst [vmem:[#allocation15_spill] sm:$0xff] %v5054_v9  ;;  %5885 = vst [vmem:[#allocation16_spill] sm:$0xff] %v5056_v10 }
 0x210   :  { %3717 = vmatmul.mubr.msk.f32.gmra.mxu0 %vm819_vm2, %v386_v18  ;;  %3762 = vmatmul.mubr.msk.f32.gmra.mxu1 %vm819_vm2, %v416_v19  ;;  %v5058_v11 = vpop.permute.xlu0 %711  ;;  %v5060_v12 = vpop.permute.xlu1 %716 }
 0x211   :  { %3719 = vmatprep.mubr.msk.f32.mxu0 %vm819_vm2, %v387_v20  ;;  %3764 = vmatprep.mubr.msk.f32.mxu1 %vm819_vm2, %v417_v21 }
 0x214   :  { %3720 = vmatmul.mubr.msk.f32.gmra.mxu0 %vm819_vm2, %v388_v24  ;;  %3765 = vmatmul.mubr.msk.f32.gmra.mxu1 %vm819_vm2, %v418_v25  ;;  %v5062_v13 = vpop.permute.xlu0 %621  ;;  %v5064_v14 = vpop.permute.xlu1 %626 }
 0x215   :  { %3722 = vmatprep.mubr.msk.f32.mxu0 %vm819_vm2, %v389_v26  ;;  %3767 = vmatprep.mubr.msk.f32.mxu1 %vm819_vm2, %v419_v28  ;;  %5886 = vst [vmem:[#allocation17_spill] sm:$0xff] %v5062_v13  ;;  %5887 = vst [vmem:[#allocation18_spill] sm:$0xff] %v5064_v14 }
 0x218   :  { %3723 = vmatmul.mubr.msk.f32.gmra.mxu0 %vm819_vm2, %v390_v29  ;;  %3768 = vmatmul.mubr.msk.f32.gmra.mxu1 %vm819_vm2, %v420_v30  ;;  %v5066_v15 = vpop.permute.xlu0 %541  ;;  %v5068_v18 = vpop.permute.xlu1 %546 }
 0x219   :  { %3725 = vmatprep.mubr.msk.f32.mxu0 %vm819_vm2, %v391_v31  ;;  %3770 = vmatprep.mubr.msk.f32.mxu1 %vm819_vm2, %v421_v32 }
 0x21c   :  { %3726 = vmatmul.mubr.msk.f32.gmra.mxu0 %vm819_vm2, %v392_v35  ;;  %3771 = vmatmul.mubr.msk.f32.gmra.mxu1 %vm819_vm2, %v422_v36  ;;  %v5070_v19 = vpop.permute.xlu0 %781  ;;  %v5072_v20 = vpop.permute.xlu1 %786 }
 0x21d   :  { %3728 = vmatprep.mubr.msk.f32.mxu0 %vm819_vm2, %v393_v37  ;;  %3773 = vmatprep.mubr.msk.f32.mxu1 %vm819_vm2, %v423_v38  ;;  %5888 = vst [vmem:[#allocation19_spill] sm:$0xff] %v5070_v19  ;;  %5889 = vst [vmem:[#allocation20_spill] sm:$0xff] %v5072_v20 }
 0x220   :  { %3729 = vmatmul.mubr.msk.f32.gmra.mxu0 %vm819_vm2, %v394_v44  ;;  %3774 = vmatmul.mubr.msk.f32.gmra.mxu1 %vm819_vm2, %v424_v45  ;;  %v5074_v21 = vpop.permute.xlu0 %701  ;;  %v5076_v24 = vpop.permute.xlu1 %706 }
 0x221   :  { %3731 = vmatprep.mubr.msk.f32.mxu0 %vm819_vm2, %v395_v46  ;;  %3776 = vmatprep.mubr.msk.f32.mxu1 %vm819_vm2, %v425_v27 }
 0x224   :  { %3732 = vmatmul.mubr.msk.f32.gmra.mxu0 %vm819_vm2, %v396_v47  ;;  %3777 = vmatmul.mubr.msk.f32.gmra.mxu1 %vm819_vm2, %v426_v48  ;;  %v5078_v25 = vpop.permute.xlu0 %611  ;;  %v5080_v26 = vpop.permute.xlu1 %616 }
 0x225   :  { %3734 = vmatprep.mubr.msk.f32.mxu0 %vm819_vm2, %v397_v49  ;;  %3779 = vmatprep.mubr.msk.f32.mxu1 %vm819_vm2, %v427_v50 }
 0x228   :  { %3735 = vmatmul.mubr.msk.f32.gmra.mxu0 %vm819_vm2, %v398_v53  ;;  %3780 = vmatmul.mubr.msk.f32.gmra.mxu1 %vm819_vm2, %v428_v54  ;;  %v5082_v28 = vpop.permute.xlu0 %531  ;;  %v5084_v29 = vpop.permute.xlu1 %536 }
 0x229   :  { %3737 = vmatprep.mubr.msk.f32.mxu0 %vm819_vm2, %v399_v55  ;;  %3782 = vmatprep.mubr.msk.f32.mxu1 %vm819_vm2, %v429_v57 }
 0x22c   :  { %3738 = vmatmul.mubr.msk.f32.gmra.mxu0 %vm819_vm2, %v400_v60  ;;  %3783 = vmatmul.mubr.msk.f32.gmra.mxu1 %vm819_vm2, %v430_v61  ;;  %v5086_v30 = vpop.permute.xlu0 %771  ;;  %v5088_v31 = vpop.permute.xlu1 %776 }
 0x22d   :  { %3785 = vmatprep.mubr.msk.f32.mxu1 %vm819_vm2, %v431_v62  ;;  %5890 = vst [vmem:[#allocation21_spill] sm:$0xff] %v5086_v30  ;;  %5891 = vst [vmem:[#allocation22_spill] sm:$0xff] %v5088_v31 }
 0x230   :  { %3786 = vmatmul.mubr.msk.f32.gmra.mxu1 %vm819_vm2, %v432_v63  ;;  %v5090_v32 = vpop.permute.xlu0 %691  ;;  %v5092_v35 = vpop.permute.xlu1 %696 }
 0x231   :  { %3788 = vmatprep.mubr.msk.f32.mxu1 %vm819_vm2, %v433_v0 }
 0x234   :  { %3789 = vmatmul.mubr.msk.f32.gmra.mxu1 %vm819_vm2, %v434_v4  ;;  %v5094_v36 = vpop.permute.xlu0 %601  ;;  %v5096_v37 = vpop.permute.xlu1 %606 }
 0x238   :  { %v522_v38 = vpop.permute.xlu0 %521  ;;  %v527_v44 = vpop.permute.xlu1 %526 }
 0x23c   :  { %v5098_v45 = vpop.permute.xlu0 %761  ;;  %v5100_v46 = vpop.permute.xlu1 %766 }
 0x23d   :  { %5892 = vst [vmem:[#allocation23_spill] sm:$0xff] %v5098_v45 }
 0x240   :  { %v5102_v27 = vpop.permute.xlu0 %681  ;;  %v5104_v47 = vpop.permute.xlu1 %686 }
 0x244   :  { %v5106_v48 = vpop.permute.xlu0 %591  ;;  %v5108_v49 = vpop.permute.xlu1 %596 }
 0x248   :  { %v512_v50 = vpop.permute.xlu0 %511  ;;  %v517_v53 = vpop.permute.xlu1 %516 }
 0x24c   :  { %v5110_v54 = vpop.permute.xlu0 %751  ;;  %v5112_v55 = vpop.permute.xlu1 %756 }
 0x250   :  { %v672_v57 = vpop.permute.xlu0 %671  ;;  %v677_v60 = vpop.permute.xlu1 %676 }
 0x254   :  { %v5114_v61 = vpop.permute.xlu0 %581  ;;  %v5116_v62 = vpop.permute.xlu1 %586 }
 0x258   :  { %v502_v63 = vpop.permute.xlu0 %501  ;;  %v507_v0 = vpop.permute.xlu1 %506 }
 0x25c   :  { %v5118_v4 = vpop.permute.xlu0 %741  ;;  %v5120_v43 = vpop.permute.xlu1 %746 }
 0x260   :  { %v662_v9 = vpop.permute.xlu0 %661  ;;  %v667_v33 = vpop.permute.xlu1 %666 }
 0x2b4   :  { %v3697_v42 = vpop.f32.mrf.mxu0  ;;  %v3742_v41 = vpop.f32.mrf.mxu1 }
 0x2b5   :  { %v1088_v30 = vadd.f32 %v3697_v42, %v507_v0  ;;  %v1238_v31 = vadd.f32 %v3742_v41, %v4828_v1 }
 0x2b6   :  { %v1082_v20 = vpop.f32.mrf.mxu0  ;;  %v1232_v19 = vpop.f32.mrf.mxu1 }
 0x2b7   :  { %v3107_v10 = vmul.f32 -1.442695, %v1088_v30  ;;  %v3137_v45 = vmul.f32 -1.442695, %v1238_v31  ;;  %v1083_v16 = vadd.f32 %v1082_v20, %v502_v63  ;;  %v1233_v17 = vadd.f32 %v1232_v19, %v4796_v56 }
 0x2b8   :  { %v3700_v51 = vpop.f32.mrf.mxu0  ;;  %v3745_v52 = vpop.f32.mrf.mxu1 }
 0x2b9   :  { %3901 = vpow2.f32 %v3107_v10  ;;  %v3106_v14 = vmul.f32 -1.442695, %v1083_v16  ;;  %v3136_v34 = vmul.f32 -1.442695, %v1233_v17  ;;  %v1098_v3 = vadd.f32 %v3700_v51, %v517_v53 }
 0x2ba   :  { %3903 = vpow2.f32 %v3137_v45  ;;  %v1248_v2 = vadd.f32 %v3745_v52, %v667_v33  ;;  %v1092_v42 = vpop.f32.mrf.mxu0  ;;  %v1242_v0 = vpop.f32.mrf.mxu1 }
 0x2bb   :  { %3905 = vpow2.f32 %v3106_v14  ;;  %v3109_v41 = vmul.f32 -1.442695, %v1098_v3  ;;  %v1093_v1 = vadd.f32 %v1092_v42, %v512_v50  ;;  %v1243_v30 = vadd.f32 %v1242_v0, %v662_v9 }
 0x2bc   :  { %3907 = vpow2.f32 %v3136_v34  ;;  %v3139_v20 = vmul.f32 -1.442695, %v1248_v2  ;;  %v3703_v31 = vpop.f32.mrf.mxu0  ;;  %v3748_v56 = vpop.f32.mrf.mxu1 }
 0x2bd   :  { %3909 = vpow2.f32 %v3109_v41  ;;  %v3108_v19 = vmul.f32 -1.442695, %v1093_v1  ;;  %v3138_v63 = vmul.f32 -1.442695, %v1243_v30  ;;  %v1108_v13 = vadd.f32 %v3703_v31, %v527_v44 }
 0x2be   :  { %3911 = vpow2.f32 %v3139_v20  ;;  %v1258_v16 = vadd.f32 %v3748_v56, %v677_v60  ;;  %v1102_v17 = vpop.f32.mrf.mxu0  ;;  %v1252_v51 = vpop.f32.mrf.mxu1 }
 0x2bf   :  { %3913 = vpow2.f32 %v3108_v19  ;;  %v3111_v33 = vmul.f32 -1.442695, %v1108_v13  ;;  %v1103_v52 = vadd.f32 %v1102_v17, %v522_v38  ;;  %v1253_v10 = vadd.f32 %v1252_v51, %v672_v57 }
 0x2c0   :  { %3915 = vpow2.f32 %v3138_v63  ;;  %v3141_v3 = vmul.f32 -1.442695, %v1258_v16  ;;  %v3706_v14 = vpop.f32.mrf.mxu0  ;;  %v3751_v9 = vpop.f32.mrf.mxu1 }
 0x2c1   :  { %3917 = vpow2.f32 %v3111_v33  ;;  %v3110_v34 = vmul.f32 -1.442695, %v1103_v52  ;;  %v3140_v2 = vmul.f32 -1.442695, %v1253_v10  ;;  %v1118_v45 = vadd.f32 %v3706_v14, %v5084_v29 }
 0x2c2   :  { %3919 = vpow2.f32 %v3141_v3  ;;  %v1268_v44 = vadd.f32 %v3751_v9, %v5104_v47  ;;  %v1112_v50 = vpop.f32.mrf.mxu0  ;;  %v1262_v53 = vpop.f32.mrf.mxu1 }
 0x2c3   :  { %3921 = vpow2.f32 %v3110_v34  ;;  %v3113_v60 = vmul.f32 -1.442695, %v1118_v45  ;;  %v1113_v13 = vadd.f32 %v1112_v50, %v5082_v28  ;;  %v1263_v38 = vadd.f32 %v1262_v53, %v5102_v27 }
 0x2c4   :  { %3923 = vpow2.f32 %v3140_v2  ;;  %v3143_v57 = vmul.f32 -1.442695, %v1268_v44  ;;  %v3709_v42 = vpop.f32.mrf.mxu0  ;;  %v3754_v0 = vpop.f32.mrf.mxu1 }
 0x2c5   :  { %3925 = vpow2.f32 %v3113_v60  ;;  %v3112_v41 = vmul.f32 -1.442695, %v1113_v13  ;;  %v3142_v1 = vmul.f32 -1.442695, %v1263_v38 }
 0x2c6   :  { %v3902_v30 = vpop.eup %3901  ;;  %3927 = vpow2.f32 %v3143_v57  ;;  %v1122_v29 = vpop.f32.mrf.mxu0 }
 0x2c7   :  { %v1272_v20 = vpop.f32.mrf.mxu1  ;;  %v3904_v47 = vpop.eup %3903  ;;  %v1594_v31 = vadd.f32 1.0, %v3902_v30  ;;  %3929 = vpow2.f32 %v3112_v41 }
 0x2c8   :  { %v3906_v56 = vpop.eup %3905  ;;  %v1624_v19 = vadd.f32 1.0, %v3904_v47  ;;  %3931 = vpow2.f32 %v3142_v1  ;;  %v3712_v28 = vpop.f32.mrf.mxu0  ;;  %v1128_v47 = vadd.f32 %v3709_v42, %v5068_v18 }
 0x2c9   :  { %v5128_v63 = vpop.f32.mrf.mxu1  ;;  %v3908_v27 = vpop.eup %3907  ;;  %3933 = vrcp.f32 %v1594_v31  ;;  %v1593_v16 = vadd.f32 1.0, %v3906_v56 }
 0x2ca   :  { %v3910_v17 = vpop.eup %3909  ;;  %3935 = vrcp.f32 %v1624_v19  ;;  %v1623_v51 = vadd.f32 1.0, %v3908_v27  ;;  %v1132_v9 = vpop.f32.mrf.mxu0  ;;  %v1278_v27 = vadd.f32 %v3754_v0, %v5092_v35  ;;  %v3115_v42 = vmul.f32 -1.442695, %v1128_v47 }
 0x2cb   :  { %v5130_v33 = vpop.f32.mrf.mxu1  ;;  %v3912_v52 = vpop.eup %3911  ;;  %3937 = vrcp.f32 %v1593_v16  ;;  %v1596_v10 = vadd.f32 1.0, %v3910_v17 }
 0x2cc   :  { %v3914_v3 = vpop.eup %3913  ;;  %3939 = vrcp.f32 %v1623_v51  ;;  %v1626_v14 = vadd.f32 1.0, %v3912_v52  ;;  %v3715_v41 = vpop.f32.mrf.mxu0  ;;  %v1123_v51 = vadd.f32 %v1122_v29, %v5066_v15 }
 0x2cd   :  { %v5132_v34 = vpop.f32.mrf.mxu1  ;;  %v3916_v2 = vpop.eup %3915  ;;  %3941 = vrcp.f32 %v1596_v10  ;;  %v1595_v45 = vadd.f32 1.0, %v3914_v3  ;;  %v1273_v3 = vadd.f32 %v1272_v20, %v5090_v32 }
 0x2ce   :  { %v3918_v44 = vpop.eup %3917  ;;  %3943 = vrcp.f32 %v1626_v14  ;;  %v1625_v50 = vadd.f32 1.0, %v3916_v2  ;;  %v1142_v14 = vpop.f32.mrf.mxu0  ;;  %v3114_v29 = vmul.f32 -1.442695, %v1123_v51 }
 0x2cf   :  { %v5134_v53 = vpop.f32.mrf.mxu1  ;;  %v3920_v60 = vpop.eup %3919  ;;  %3945 = vrcp.f32 %v1595_v45  ;;  %v1598_v13 = vadd.f32 1.0, %v3918_v44  ;;  %v1138_v45 = vadd.f32 %v3712_v28, %v5052_v8  ;;  %v3144_v20 = vmul.f32 -1.442695, %v1273_v3 }
 0x2d0   :  { %v3922_v38 = vpop.eup %3921  ;;  %3947 = vrcp.f32 %v1625_v50  ;;  %v1628_v57 = vadd.f32 1.0, %v3920_v60  ;;  %v3145_v50 = vmul.f32 -1.442695, %v1278_v27  ;;  %v1133_v60 = vadd.f32 %v1132_v9, %v5050_v5 }
 0x2d1   :  { %v3924_v1 = vpop.eup %3923  ;;  %3949 = vrcp.f32 %v1598_v13  ;;  %v1597_v30 = vadd.f32 1.0, %v3922_v38  ;;  %v5137_v31 = vpop.f32.mrf.mxu1  ;;  %v3117_v8 = vmul.f32 -1.442695, %v1138_v45  ;;  %v1148_v28 = vadd.f32 %v3715_v41, %v4962_v40  ;;  %v3799_v40 = vld [vmem:[%s5852_s4 + $0x4] ss:$16 sps:$4 sm:$0xff]  }
 0x2d2   :  { %v3926_v56 = vpop.eup %3925  ;;  %3951 = vrcp.f32 %v1628_v57  ;;  %v1627_v19 = vadd.f32 1.0, %v3924_v1  ;;  %v3718_v13 = vpop.f32.mrf.mxu0  ;;  %v3116_v9 = vmul.f32 -1.442695, %v1133_v60  ;;  %2425 = vmatprep.mubr.bf16.mxu0 %v3799_v40 }
 0x2d3   :  { %v3928_v16 = vpop.eup %3927  ;;  %3953 = vrcp.f32 %v1597_v30  ;;  %v1600_v17 = vadd.f32 1.0, %v3926_v56  ;;  %v5143_v44 = vpop.f32.mrf.mxu1  ;;  %v1143_v56 = vadd.f32 %v1142_v14, %v4960_v39 }
 0x2d4   :  { %v3930_v52 = vpop.eup %3929  ;;  %3955 = vrcp.f32 %v1627_v19  ;;  %v1630_v10 = vadd.f32 1.0, %v3928_v16  ;;  %v1152_v27 = vpop.f32.mrf.mxu0  ;;  %v3119_v16 = vmul.f32 -1.442695, %v1148_v28 }
 0x2d5   :  { %v3932_v2 = vpop.eup %3931  ;;  %3957 = vrcp.f32 %v1600_v17  ;;  %v1599_v18 = vadd.f32 1.0, %v3930_v52  ;;  %v5151_v57 = vpop.f32.mrf.mxu1  ;;  %v1158_v17 = vadd.f32 %v3718_v13, %v4850_v7  ;;  %v3118_v14 = vmul.f32 -1.442695, %v1143_v56 }
 0x2d6   :  { %v5145_v35 = vpop.eup %3933  ;;  %3959 = vrcp.f32 %v1630_v10  ;;  %v1629_v0 = vadd.f32 1.0, %v3932_v2  ;;  %v1153_v2 = vadd.f32 %v1152_v27, %v4848_v6 }
 0x2d7   :  { %5893 = vst [vmem:[#allocation24_spill] sm:$0xff] %v5145_v35  ;;  %v3936_v15 = vpop.eup %3935  ;;  %3961 = vrcp.f32 %v1599_v18  ;;  %v5168_v51 = vpop.f32.mrf.mxu1 }
 0x2d8   :  { %v5148_v32 = vpop.eup %3937  ;;  %3963 = vrcp.f32 %v1629_v0  ;;  %v3120_v6 = vmul.f32 -1.442695, %v1153_v2 }
 0x2d9   :  { %5894 = vst [vmem:[#allocation25_spill] sm:$0xff] %v5148_v32  ;;  %v3940_v38 = vpop.eup %3939  ;;  %3965 = vpow2.f32 %v3115_v42  ;;  %v3121_v42 = vmul.f32 -1.442695, %v1158_v17  ;;  %v5183_v45 = vpop.f32.mrf.mxu1  ;;  %v3805_v17 = vld [vmem:[%s5852_s4 + $0xc] ss:$16 sps:$4 sm:$0xff]  }
 0x2da   :  { %v5153_v1 = vpop.eup %3941  ;;  %3967 = vpow2.f32 %v3145_v50  ;;  %v1864_v30 = vpack.c.bf16 %v3936_v15, %v3940_v38  ;;  %2586 = vmatprep.mubr.bf16.mxu1 %v3805_v17 }
 0x2db   :  { %5895 = vst [vmem:[#allocation26_spill] sm:$0xff] %v5153_v1  ;;  %v5157_v5 = vpop.eup %3943  ;;  %3969 = vpow2.f32 %v3114_v29  ;;  %v5199_v38 = vpop.f32.mrf.mxu1 }
 0x2dc   :  { %5896 = vst [vmem:[#allocation27_spill] sm:$0xff] %v5157_v5  ;;  %v5160_v19 = vpop.eup %3945  ;;  %3971 = vpow2.f32 %v3144_v20  ;;  %3369 = vmatprep.subr.bf16.mxu0 %v1864_v30  ;;  %v5195_v20 = vpop.f32.mrf.mxu0  ;;  %v1283_v30 = vadd.f32 %v5130_v33, %v5074_v21 }
 0x2dd   :  { %5897 = vst [vmem:[#allocation28_spill] sm:$0xff] %v5160_v19  ;;  %v5165_v41 = vpop.eup %3947  ;;  %3973 = vpow2.f32 %v3117_v8  ;;  %v5212_v10 = vpop.f32.mrf.mxu1  ;;  %v1168_v35 = vadd.f32 %v5195_v20, %v5116_v62 }
 0x2de   :  { %5898 = vst [vmem:[#allocation29_spill] sm:$0xff] %v5165_v41  ;;  %v5170_v52 = vpop.eup %3949  ;;  %3975 = vpow2.f32 %v3116_v9 }
 0x2df   :  { %v5176_v3 = vpop.eup %3951  ;;  %3977 = vpow2.f32 %v3119_v16  ;;  %v5205_v16 = vpop.f32.mrf.mxu0  ;;  %v3123_v62 = vmul.f32 -1.442695, %v1168_v35 }
 0x2e0   :  { %5899 = vst [vmem:[#allocation30_spill] sm:$0xff] %v5176_v3  ;;  %v5179_v18 = vpop.eup %3953  ;;  %3979 = vpow2.f32 %v3118_v14 }
 0x2e1   :  { %v5181_v7 = vpop.eup %3955  ;;  %3981 = vpow2.f32 %v3121_v42  ;;  %v1288_v42 = vadd.f32 %v5128_v63, %v5076_v24  ;;  %v5216_v47 = vpop.f32.mrf.mxu0  ;;  %v1298_v24 = vadd.f32 %v5132_v34, %v5060_v12 }
 0x2e2   :  { %5900 = vst [vmem:[#allocation31_spill] sm:$0xff] %v5181_v7  ;;  %v5185_v0 = vpop.eup %3957  ;;  %3983 = vpow2.f32 %v3120_v6  ;;  %v5220_v63 = vpop.f32.mrf.mxu1 }
 0x2e3   :  { %v5191_v29 = vpop.eup %3959  ;;  %v3149_v21 = vmul.f32 -1.442695, %v1298_v24 }
 0x2e4   :  { %5901 = vst [vmem:[#allocation32_spill] sm:$0xff] %v5191_v29  ;;  %v5193_v60 = vpop.eup %3961  ;;  %v5228_v12 = vpop.f32.mrf.mxu1 }
 0x2e5   :  { %v5197_v13 = vpop.eup %3963 }
 0x2e6   :  { %5902 = vst [vmem:[#allocation33_spill] sm:$0xff] %v5197_v13  ;;  %v3966_v8 = vpop.eup %3965 }
 0x2e7   :  { %v3968_v9 = vpop.eup %3967  ;;  %v1602_v56 = vadd.f32 1.0, %v3966_v8 }
 0x2e8   :  { %v3970_v27 = vpop.eup %3969  ;;  %v1632_v40 = vadd.f32 1.0, %v3968_v9 }
 0x2e9   :  { %v3972_v14 = vpop.eup %3971  ;;  %3985 = vrcp.f32 %v1602_v56  ;;  %v1601_v2 = vadd.f32 1.0, %v3970_v27  ;;  %v3147_v56 = vmul.f32 -1.442695, %v1288_v42  ;;  %v1308_v42 = vadd.f32 %v5137_v31, %v5018_v59 }
 0x2ea   :  { %v3974_v15 = vpop.eup %3973  ;;  %3987 = vrcp.f32 %v1632_v40  ;;  %v1631_v8 = vadd.f32 1.0, %v3972_v14  ;;  %v1293_v14 = vadd.f32 %v5134_v53, %v5058_v11 }
 0x2eb   :  { %3989 = vrcp.f32 %v1601_v2  ;;  %v1604_v6 = vadd.f32 1.0, %v3974_v15  ;;  %v3976_v9 = vpop.eup %3975  ;;  %v3146_v15 = vmul.f32 -1.442695, %v1283_v30  ;;  %v5224_v2 = vpop.f32.mrf.mxu0 }
 0x2ec   :  { %3991 = vrcp.f32 %v1631_v8  ;;  %v1603_v27 = vadd.f32 1.0, %v3976_v9  ;;  %v3978_v39 = vpop.eup %3977  ;;  %v3148_v11 = vmul.f32 -1.442695, %v1293_v14 }
 0x2ed   :  { %3993 = vrcp.f32 %v1604_v6  ;;  %v1606_v40 = vadd.f32 1.0, %v3978_v39  ;;  %v3980_v17 = vpop.eup %3979  ;;  %v1303_v39 = vadd.f32 %v5143_v44, %v5016_v58  ;;  %v5232_v53 = vpop.f32.mrf.mxu0  ;;  %v3151_v6 = vmul.f32 -1.442695, %v1308_v42 }
 0x2ee   :  { %3995 = vrcp.f32 %v1603_v27  ;;  %v1605_v33 = vadd.f32 1.0, %v3980_v17  ;;  %v3982_v34 = vpop.eup %3981 }
 0x2ef   :  { %3997 = vpow2.f32 %v3147_v56  ;;  %v1608_v30 = vadd.f32 1.0, %v3982_v34  ;;  %v3984_v8 = vpop.eup %3983  ;;  %v5234_v56 = vpop.f32.mrf.mxu1  ;;  %v3150_v31 = vmul.f32 -1.442695, %v1303_v39 }
 0x2f0   :  { %3999 = vrcp.f32 %v1606_v40  ;;  %v1607_v9 = vadd.f32 1.0, %v3984_v8  ;;  %v5242_v44 = vpop.f32.mrf.mxu0 }
 0x2f1   :  { %4001 = vrcp.f32 %v1605_v33  ;;  %v5246_v40 = vpop.f32.mrf.mxu1 }
 0x2f2   :  { %4003 = vpow2.f32 %v3146_v15  ;;  %v5256_v33 = vpop.f32.mrf.mxu0 }
 0x2f3   :  { %4005 = vpow2.f32 %v3149_v21  ;;  %v5258_v42 = vpop.f32.mrf.mxu1 }
 0x2f4   :  { %4007 = vrcp.f32 %v1608_v30 }
 0x2f5   :  { %4009 = vrcp.f32 %v1607_v9  ;;  %v5268_v9 = vpop.f32.mrf.mxu1 }
 0x2f6   :  { %v5236_v59 = vpop.eup %3985  ;;  %4011 = vpow2.f32 %v3148_v11  ;;  %v5266_v11 = vpop.f32.mrf.mxu0 }
 0x2f7   :  { %v5238_v27 = vpop.eup %3987  ;;  %4013 = vpow2.f32 %v3151_v6  ;;  %v5274_v5 = vpop.f32.mrf.mxu1 }
 0x2f8   :  { %5903 = vst [vmem:[#allocation34_spill] sm:$0xff] %v5238_v27  ;;  %v5240_v58 = vpop.eup %3989  ;;  %4015 = vpow2.f32 %v3150_v31  ;;  %v5272_v17 = vpop.f32.mrf.mxu0  ;;  %v1318_v31 = vadd.f32 %v5151_v57, %v4906_v23  ;;  %v1328_v57 = vadd.f32 %v5183_v45, %v5120_v43  ;;  %v1338_v43 = vadd.f32 %v5212_v10, %v5112_v55 }
 0x2f9   :  { %v5244_v24 = vpop.eup %3991  ;;  %v5282_v1 = vpop.f32.mrf.mxu1  ;;  %v1348_v55 = vadd.f32 %v5228_v12, %v5100_v46 }
 0x2fa   :  { %5904 = vst [vmem:[#allocation35_spill] sm:$0xff] %v5244_v24  ;;  %v5252_v14 = vpop.eup %3993  ;;  %v1202_v27 = vpop.f32.mrf.mxu0  ;;  %v3153_v23 = vmul.f32 -1.442695, %v1318_v31 }
 0x2fb   :  { %v5254_v21 = vpop.eup %3995  ;;  %v3159_v12 = vmul.f32 -1.442695, %v1348_v55  ;;  %v5914_v55 = vld [vmem:[#allocation8_spill] sm:$0xff] }
 0x2fc   :  { %v3998_v39 = vpop.eup %3997 }
 0x2fd   :  { %v5262_v30 = vpop.eup %3999  ;;  %v1634_v34 = vadd.f32 1.0, %v3998_v39  ;;  %v1163_v39 = vadd.f32 %v5205_v16, %v5114_v61 }
 0x2fe   :  { %v5264_v8 = vpop.eup %4001 }
 0x2ff   :  { %v4004_v6 = vpop.eup %4003  ;;  %4017 = vrcp.f32 %v1634_v34  ;;  %v3122_v61 = vmul.f32 -1.442695, %v1163_v39  ;;  %v5907_v34 = vld [vmem:[#allocation14_spill] sm:$0xff] }
 0x300   :  { %v4006_v15 = vpop.eup %4005  ;;  %v1633_v13 = vadd.f32 1.0, %v4004_v6  ;;  %v5908_v39 = vld [vmem:[#allocation10_spill] sm:$0xff] }
 0x301   :  { %v4008_v50 = vpop.eup %4007  ;;  %v1636_v32 = vadd.f32 1.0, %v4006_v15  ;;  %v5906_v15 = vld [vmem:[#allocation13_spill] sm:$0xff] }
 0x302   :  { %v4010_v28 = vpop.eup %4009  ;;  %4019 = vrcp.f32 %v1633_v13 }
 0x303   :  { %v4012_v41 = vpop.eup %4011  ;;  %v1856_v7 = vpack.c.bf16 %v4008_v50, %v4010_v28  ;;  %v1313_v28 = vadd.f32 %v5168_v51, %v4904_v22  ;;  %4021 = vrcp.f32 %v1636_v32  ;;  %v1323_v22 = vadd.f32 %v5199_v38, %v5118_v4 }
 0x304   :  { %v4014_v3 = vpop.eup %4013  ;;  %v1635_v24 = vadd.f32 1.0, %v4012_v41  ;;  %v1178_v41 = vadd.f32 %v5216_v47, %v5108_v49  ;;  %v1188_v49 = vadd.f32 %v5232_v53, %v5096_v37  ;;  %v3155_v32 = vmul.f32 -1.442695, %v1328_v57 }
 0x305   :  { %v4016_v29 = vpop.eup %4015  ;;  %3370 = vmatpush3.bf16.msra.mxu0 %v1856_v7  ;;  %v1638_v19 = vadd.f32 1.0, %v4014_v3  ;;  %v3736_v3 = vpop.f32.mrf.mxu0  ;;  %v1173_v7 = vadd.f32 %v5224_v2, %v5106_v48  ;;  %v3152_v20 = vmul.f32 -1.442695, %v1313_v28  ;;  %v1183_v48 = vadd.f32 %v5242_v44, %v5094_v36 }
 0x306   :  { %v1637_v50 = vadd.f32 1.0, %v4016_v29  ;;  %4023 = vrcp.f32 %v1635_v24  ;;  %v1372_v29 = vpop.f32.mrf.mxu1  ;;  %v3125_v35 = vmul.f32 -1.442695, %v1178_v41  ;;  %v3154_v45 = vmul.f32 -1.442695, %v1323_v22 }
 0x307   :  { %4025 = vrcp.f32 %v1638_v19  ;;  %v1212_v47 = vpop.f32.mrf.mxu0  ;;  %v3124_v19 = vmul.f32 -1.442695, %v1173_v7  ;;  %v1333_v4 = vadd.f32 %v5220_v63, %v5110_v54  ;;  %v3127_v13 = vmul.f32 -1.442695, %v1188_v49  ;;  %v5905_v63 = vld [vmem:[#allocation17_spill] sm:$0xff] }
 0x308   :  { %4027 = vrcp.f32 %v1637_v50  ;;  %v3787_v51 = vpop.f32.mrf.mxu1  ;;  %v1198_v37 = vadd.f32 %v5256_v33, %v5080_v26  ;;  %v3157_v38 = vmul.f32 -1.442695, %v1338_v43  ;;  %v3126_v16 = vmul.f32 -1.442695, %v1183_v48 }
 0x309   :  { %4029 = vpow2.f32 %v3123_v62  ;;  %v3739_v10 = vpop.f32.mrf.mxu0  ;;  %v1193_v36 = vadd.f32 %v5266_v11, %v5078_v25  ;;  %v3156_v54 = vmul.f32 -1.442695, %v1333_v4  ;;  %v1203_v44 = vadd.f32 %v1202_v27, %v5905_v63  ;;  %v5909_v62 = vld [vmem:[#allocation18_spill] sm:$0xff]  ;;  %v5913_v4 = vld [vmem:[#allocation11_spill] sm:$0xff] }
 0x30a   :  { %4031 = vpow2.f32 %v3153_v23  ;;  %v1382_v2 = vpop.f32.mrf.mxu1  ;;  %v3129_v26 = vmul.f32 -1.442695, %v1198_v37  ;;  %v1213_v33 = vadd.f32 %v1212_v47, %v5906_v15  ;;  %v1218_v6 = vadd.f32 %v3736_v3, %v5907_v34  ;;  %v5910_v3 = vld [vmem:[#allocation9_spill] sm:$0xff]  ;;  %v5912_v47 = vld [vmem:[#allocation12_spill] sm:$0xff] }
 0x30b   :  { %4033 = vpow2.f32 %v3122_v61  ;;  %v1222_v25 = vpop.f32.mrf.mxu0  ;;  %v3128_v31 = vmul.f32 -1.442695, %v1193_v36  ;;  %v1228_v50 = vadd.f32 %v3739_v10, %v5908_v39  ;;  %v1208_v41 = vadd.f32 %v5272_v17, %v5909_v62  ;;  %v5915_v36 = vld [vmem:[#allocation7_spill] sm:$0xff] }
 0x30c   :  { %4035 = vpow2.f32 %v3152_v20  ;;  %v5308_v53 = vpop.eup %4017  ;;  %v3790_v27 = vpop.f32.mrf.mxu1  ;;  %v3130_v23 = vmul.f32 -1.442695, %v1203_v44  ;;  %v3132_v61 = vmul.f32 -1.442695, %v1213_v33  ;;  %v1223_v7 = vadd.f32 %v1222_v25, %v5910_v3 }
 0x30d   :  { %4037 = vpow2.f32 %v3125_v35  ;;  %v3133_v22 = vmul.f32 -1.442695, %v1218_v6  ;;  %v5911_v35 = vld [vmem:[#allocation15_spill] sm:$0xff]  ;;  %v3135_v43 = vmul.f32 -1.442695, %v1228_v50  ;;  %v1398_v10 = vadd.f32 %v3790_v27, %v5914_v55 }
 0x30e   :  { %4039 = vpow2.f32 %v3155_v32  ;;  %v1373_v49 = vadd.f32 %v1372_v29, %v5911_v35  ;;  %v1392_v48 = vpop.f32.mrf.mxu1  ;;  %v5921_v35 = vld [vmem:[#allocation21_spill] sm:$0xff] }
 0x30f   :  { %4041 = vpow2.f32 %v3124_v19  ;;  %v5311_v24 = vpop.eup %4019  ;;  %v1388_v19 = vadd.f32 %v3787_v51, %v5912_v47  ;;  %v5916_v51 = vld [vmem:[#allocation23_spill] sm:$0xff]  ;;  %v3169_v6 = vmul.f32 -1.442695, %v1398_v10 }
 0x310   :  { %4043 = vpow2.f32 %v3154_v45  ;;  %v5314_v46 = vpop.eup %4021  ;;  %v3131_v45 = vmul.f32 -1.442695, %v1208_v41  ;;  %v3164_v29 = vmul.f32 -1.442695, %v1373_v49  ;;  %v1343_v44 = vadd.f32 %v5234_v56, %v5916_v51  ;;  %v5919_v41 = vld [vmem:[#allocation20_spill] sm:$0xff] }
 0x311   :  { %4045 = vpow2.f32 %v3127_v13  ;;  %v1383_v13 = vadd.f32 %v1382_v2, %v5913_v4  ;;  %v5917_v2 = vld [vmem:[#allocation16_spill] sm:$0xff]  ;;  %v1353_v49 = vadd.f32 %v5258_v42, %v5921_v35 }
 0x312   :  { %4047 = vpow2.f32 %v3157_v38  ;;  %v3134_v38 = vmul.f32 -1.442695, %v1223_v7  ;;  %v1378_v33 = vadd.f32 %v5282_v1, %v5917_v2  ;;  %v3158_v27 = vmul.f32 -1.442695, %v1343_v44  ;;  %v5920_v7 = vld [vmem:[#allocation22_spill] sm:$0xff] }
 0x313   :  { %v5317_v11 = vpop.eup %4023  ;;  %4049 = vpow2.f32 %v3126_v16  ;;  %v1368_v1 = vadd.f32 %v5268_v9, %v5919_v41 }
 0x314   :  { %v5320_v28 = vpop.eup %4025  ;;  %4051 = vpow2.f32 %v3156_v54  ;;  %v1393_v54 = vadd.f32 %v1392_v48, %v5915_v36 }
 0x315   :  { %v5324_v57 = vpop.eup %4027  ;;  %4053 = vpow2.f32 %v3129_v26  ;;  %v3167_v26 = vmul.f32 -1.442695, %v1388_v19  ;;  %v3163_v48 = vmul.f32 -1.442695, %v1368_v1 }
 0x316   :  { %v5327_v20 = vpop.eup %4029  ;;  %4055 = vpow2.f32 %v3159_v12  ;;  %v3166_v12 = vmul.f32 -1.442695, %v1383_v13  ;;  %v3168_v56 = vmul.f32 -1.442695, %v1393_v54  ;;  %v3160_v13 = vmul.f32 -1.442695, %v1353_v49 }
 0x317   :  { %v4032_v32 = vpop.eup %4031  ;;  %4057 = vpow2.f32 %v3128_v31  ;;  %v5918_v31 = vld [vmem:[#allocation19_spill] sm:$0xff] }
 0x318   :  { %v5331_v17 = vpop.eup %4033  ;;  %4059 = vpow2.f32 %v3130_v23  ;;  %v1363_v39 = vadd.f32 %v5274_v5, %v5918_v31  ;;  %v3165_v23 = vmul.f32 -1.442695, %v1378_v33  ;;  %v1640_v3 = vadd.f32 1.0, %v4032_v32 }
 0x319   :  { %v4036_v37 = vpop.eup %4035  ;;  %4061 = vpow2.f32 %v3132_v61 }
 0x31a   :  { %v5335_v16 = vpop.eup %4037  ;;  %4063 = vpow2.f32 %v3133_v22  ;;  %v1358_v22 = vadd.f32 %v5246_v40, %v5920_v7  ;;  %v1639_v19 = vadd.f32 1.0, %v4036_v37 }
 0x31b   :  { %v5338_v63 = vpop.eup %4039  ;;  %4065 = vpow2.f32 %v3135_v43  ;;  %v3162_v43 = vmul.f32 -1.442695, %v1363_v39 }
 0x31c   :  { %v5342_v15 = vpop.eup %4041  ;;  %4067 = vpow2.f32 %v3131_v45  ;;  %v3161_v32 = vmul.f32 -1.442695, %v1358_v22 }
 0x31d   :  { %v5346_v34 = vpop.eup %4043  ;;  %4069 = vpow2.f32 %v3134_v38 }
 0x31e   :  { %v5348_v25 = vpop.eup %4045  ;;  %4071 = vpow2.f32 %v3164_v29 }
 0x31f   :  { %v5352_v50 = vpop.eup %4047  ;;  %4073 = vpow2.f32 %v3167_v26 }
 0x320   :  { %v5354_v62 = vpop.eup %4049  ;;  %4075 = vpow2.f32 %v3166_v12 }
 0x321   :  { %v5358_v61 = vpop.eup %4051  ;;  %4077 = vpow2.f32 %v3169_v6 }
 0x322   :  { %v4054_v5 = vpop.eup %4053  ;;  %4079 = vpow2.f32 %v3168_v56 }
 0x323   :  { %v5364_v47 = vpop.eup %4055  ;;  %4081 = vpow2.f32 %v3158_v27  ;;  %v1616_v22 = vadd.f32 1.0, %v4054_v5  ;;  %v1611_v5 = vadd.f32 1.0, %v5342_v15 }
 0x324   :  { %v4058_v9 = vpop.eup %4057  ;;  %4083 = vpow2.f32 %v3165_v23 }
 0x325   :  { %v4060_v45 = vpop.eup %4059  ;;  %4085 = vrcp.f32 %v1640_v3  ;;  %v1615_v1 = vadd.f32 1.0, %v4058_v9  ;;  %v1614_v9 = vadd.f32 1.0, %v5348_v25 }
 0x326   :  { %v4062_v4 = vpop.eup %4061  ;;  %4087 = vpow2.f32 %v3162_v43  ;;  %v1617_v37 = vadd.f32 1.0, %v4060_v45 }
 0x327   :  { %v4064_v40 = vpop.eup %4063  ;;  %4089 = vrcp.f32 %v1639_v19  ;;  %v1619_v38 = vadd.f32 1.0, %v4062_v4  ;;  %v1613_v19 = vadd.f32 1.0, %v5354_v62  ;;  %v1612_v62 = vadd.f32 1.0, %v5335_v16 }
 0x328   :  { %v4066_v55 = vpop.eup %4065  ;;  %4091 = vpow2.f32 %v3163_v48  ;;  %v1620_v54 = vadd.f32 1.0, %v4064_v40  ;;  %v1610_v16 = vadd.f32 1.0, %v5327_v20 }
 0x329   :  { %v4068_v42 = vpop.eup %4067  ;;  %4093 = vpow2.f32 %v3161_v32  ;;  %v1622_v10 = vadd.f32 1.0, %v4066_v55 }
 0x32a   :  { %v4070_v29 = vpop.eup %4069  ;;  %4095 = vpow2.f32 %v3160_v13  ;;  %v1618_v6 = vadd.f32 1.0, %v4068_v42 }
 0x32b   :  { %v4072_v36 = vpop.eup %4071  ;;  %4097 = vrcp.f32 %v1619_v38  ;;  %v1621_v51 = vadd.f32 1.0, %v4070_v29 }
 0x32c   :  { %v4074_v44 = vpop.eup %4073  ;;  %4099 = vrcp.f32 %v1622_v10  ;;  %v1651_v3 = vadd.f32 1.0, %v4072_v36  ;;  %v1609_v36 = vadd.f32 1.0, %v5331_v17 }
 0x32d   :  { %v4076_v26 = vpop.eup %4075  ;;  %4101 = vrcp.f32 %v1621_v51  ;;  %v1654_v56 = vadd.f32 1.0, %v4074_v44  ;;  %v5922_v44 = vpack.c.bf16 %v5262_v30, %v5264_v8  ;;  %v5923_v30 = vpack.c.bf16 %v5252_v14, %v5254_v21 }
 0x32e   :  { %v4078_v2 = vpop.eup %4077  ;;  %4103 = vrcp.f32 %v1617_v37  ;;  %v1653_v33 = vadd.f32 1.0, %v4076_v26  ;;  %v1641_v14 = vadd.f32 1.0, %v5346_v34  ;;  %v5924_v21 = vpack.c.bf16 %v5236_v59, %v5240_v58 }
 0x32f   :  { %v4080_v12 = vpop.eup %4079  ;;  %4105 = vrcp.f32 %v1620_v54  ;;  %v1656_v31 = vadd.f32 1.0, %v4078_v2  ;;  %v5925_v59 = vpack.c.bf16 %v5185_v0, %v5193_v60 }
 0x330   :  { %v4082_v39 = vpop.eup %4081  ;;  %4107 = vrcp.f32 %v1653_v33  ;;  %v1655_v27 = vadd.f32 1.0, %v4080_v12  ;;  %v1646_v33 = vadd.f32 1.0, %v5364_v47 }
 0x331   :  { %v4084_v41 = vpop.eup %4083  ;;  %4109 = vrcp.f32 %v1656_v31  ;;  %v1645_v15 = vadd.f32 1.0, %v4082_v39 }
 0x332   :  { %v5366_v23 = vpop.eup %4085  ;;  %4111 = vrcp.f32 %v1655_v27  ;;  %v1652_v49 = vadd.f32 1.0, %v4084_v41  ;;  %v1644_v27 = vadd.f32 1.0, %v5352_v50 }
 0x333   :  { %v4088_v7 = vpop.eup %4087  ;;  %4113 = vrcp.f32 %v1618_v6 }
 0x334   :  { %v4090_v35 = vpop.eup %4089  ;;  %4115 = vrcp.f32 %v1654_v56  ;;  %v1649_v45 = vadd.f32 1.0, %v4088_v7  ;;  %v1643_v56 = vadd.f32 1.0, %v5358_v61  ;;  %v1871_v61 = vpack.c.bf16 %v5320_v28, %v5324_v57 }
 0x335   :  { %v4092_v43 = vpop.eup %4091  ;;  %4117 = vrcp.f32 %v1615_v1  ;;  %v1872_v31 = vpack.c.bf16 %v5366_v23, %v4090_v35  ;;  %v1870_v28 = vpack.c.bf16 %v5314_v46, %v5317_v11  ;;  %v5926_v46 = vpack.c.bf16 %v5170_v52, %v5179_v18  ;;  %v3797_v18 = vld [vmem:[%s5852_s4] ss:$16 sps:$4 sm:$0xff]  }
 0x336   :  { %v4094_v48 = vpop.eup %4093  ;;  %4119 = vrcp.f32 %v1651_v3  ;;  %v1650_v13 = vadd.f32 1.0, %v4092_v43 }
 0x337   :  { %v4096_v32 = vpop.eup %4095  ;;  %4121 = vrcp.f32 %v1616_v22  ;;  %v1648_v37 = vadd.f32 1.0, %v4094_v48  ;;  %v1642_v22 = vadd.f32 1.0, %v5338_v63  ;;  %v1869_v48 = vpack.c.bf16 %v5308_v53, %v5311_v24  ;;  %v5930_v53 = vld [vmem:[#allocation34_spill] sm:$0xff]  ;;  %v5931_v24 = vld [vmem:[#allocation35_spill] sm:$0xff] }
 0x338   :  { %v4098_v4 = vpop.eup %4097  ;;  %4123 = vrcp.f32 %v1652_v49  ;;  %v1647_v55 = vadd.f32 1.0, %v4096_v32 }
 0x339   :  { %v4100_v40 = vpop.eup %4099  ;;  %4125 = vrcp.f32 %v1613_v19 }
 0x33a   :  { %v4102_v38 = vpop.eup %4101  ;;  %4127 = vrcp.f32 %v1649_v45 }
 0x33b   :  { %v4104_v42 = vpop.eup %4103  ;;  %4129 = vrcp.f32 %v1614_v9  ;;  %v1863_v10 = vpack.c.bf16 %v4100_v40, %v4102_v38 }
 0x33c   :  { %v4106_v29 = vpop.eup %4105  ;;  %4131 = vrcp.f32 %v1650_v13  ;;  %v5928_v13 = vld [vmem:[#allocation28_spill] sm:$0xff] }
 0x33d   :  { %v4108_v25 = vpop.eup %4107  ;;  %4133 = vrcp.f32 %v1611_v5  ;;  %3371 = vmatprep.subr.bf16.mxu0 %v1863_v10  ;;  %v1862_v54 = vpack.c.bf16 %v4106_v29, %v4098_v4  ;;  %v5927_v4 = vld [vmem:[#allocation26_spill] sm:$0xff] }
 0x33e   :  { %v4110_v51 = vpop.eup %4109  ;;  %4135 = vrcp.f32 %v1647_v55  ;;  %3372 = vmatpush3.bf16.msra.mxu0 %v5922_v44  ;;  %v5929_v40 = vpack.c.bf16 %v5927_v4, %v5928_v13  ;;  %v5932_v55 = vpack.c.bf16 %v5930_v53, %v5931_v24  ;;  %v3859_v4 = vld [vmem:[%s5852_s4 + $0x128] ss:$16 sps:$4 sm:$0xff]   ;;  %v3860_v13 = vld [vmem:[%s5852_s4 + $0x164] ss:$16 sps:$4 sm:$0xff]   ;;  %v3869_v24 = vld [vmem:[%s5852_s4 + $0x16c] ss:$16 sps:$4 sm:$0xff]  }
 0x33f   :  { %v4112_v26 = vpop.eup %4111  ;;  %4137 = vrcp.f32 %v1612_v62  ;;  %3373 = vmatprep.subr.bf16.mxu0 %v1862_v54  ;;  %v5934_v62 = vld [vmem:[#allocation25_spill] sm:$0xff] }
 0x340   :  { %v4114_v2 = vpop.eup %4113  ;;  %4139 = vrcp.f32 %v1648_v37  ;;  %v1880_v17 = vpack.c.bf16 %v4110_v51, %v4112_v26  ;;  %v3800_v37 = vld [vmem:[%s5852_s4 + $0x24] ss:$16 sps:$4 sm:$0xff]   ;;  %v5939_v26 = vld [vmem:[#allocation30_spill] sm:$0xff] }
 0x341   :  { %v4116_v12 = vpop.eup %4115  ;;  %4141 = vrcp.f32 %v1609_v36  ;;  %v1861_v6 = vpack.c.bf16 %v4114_v2, %v4104_v42  ;;  %v5933_v42 = vld [vmem:[#allocation24_spill] sm:$0xff]  ;;  %v5937_v54 = vld [vmem:[#allocation33_spill] sm:$0xff] }
 0x342   :  { %v4118_v39 = vpop.eup %4117  ;;  %4143 = vrcp.f32 %v1645_v15  ;;  %3374 = vmatpush3.bf16.msra.mxu0 %v5923_v30  ;;  %3481 = vmatprep.subr.bf16.mxu1 %v1880_v17  ;;  %v1879_v8 = vpack.c.bf16 %v4116_v12, %v4108_v25  ;;  %v5935_v10 = vpack.c.bf16 %v5933_v42, %v5934_v62  ;;  %v5936_v36 = vld [vmem:[#allocation32_spill] sm:$0xff]  ;;  %v3806_v12 = vld [vmem:[%s5852_s4 + $0x44] ss:$16 sps:$4 sm:$0xff]  }
 0x343   :  { %v4120_v20 = vpop.eup %4119  ;;  %4145 = vrcp.f32 %v1610_v16  ;;  %3375 = vmatprep.subr.bf16.mxu0 %v1861_v6  ;;  %3482 = vmatpush3.bf16.msra.mxu1 %v1872_v31  ;;  %v5938_v51 = vpack.c.bf16 %v5936_v36, %v5937_v54  ;;  %v5940_v16 = vld [vmem:[#allocation31_spill] sm:$0xff]  ;;  %v5943_v31 = vld [vmem:[#allocation29_spill] sm:$0xff]  ;;  %v3875_v42 = vld [vmem:[%s5852_s4 + $0x18c] ss:$16 sps:$4 sm:$0xff]  }
 0x344   :  { %v4122_v47 = vpop.eup %4121  ;;  %4147 = vrcp.f32 %v1646_v33  ;;  %3483 = vmatprep.subr.bf16.mxu1 %v1879_v8  ;;  %v5941_v2 = vpack.c.bf16 %v5939_v26, %v5940_v16  ;;  %v3802_v33 = vld [vmem:[%s5852_s4 + $0x20] ss:$16 sps:$4 sm:$0xff]   ;;  %v3803_v17 = vld [vmem:[%s5852_s4 + $0x8] ss:$16 sps:$4 sm:$0xff]   ;;  %v3866_v53 = vld [vmem:[%s5852_s4 + $0x184] ss:$16 sps:$4 sm:$0xff]  }
 0x345   :  { %v4124_v41 = vpop.eup %4123  ;;  %v1860_v1 = vpack.c.bf16 %v4122_v47, %v4118_v39  ;;  %4149 = vrcp.f32 %v1643_v56  ;;  %v5942_v6 = vld [vmem:[#allocation27_spill] sm:$0xff]  ;;  %v3809_v56 = vld [vmem:[%s5852_s4 + $0x2c] ss:$16 sps:$4 sm:$0xff]  }
 0x346   :  { %v4126_v23 = vpop.eup %4125  ;;  %3376 = vmatpush3.bf16.msra.mxu0 %v5924_v21  ;;  %v1878_v3 = vpack.c.bf16 %v4124_v41, %v4120_v20  ;;  %4151 = vrcp.f32 %v1644_v27  ;;  %v5944_v39 = vpack.c.bf16 %v5942_v6, %v5943_v31  ;;  %v3808_v30 = vld [vmem:[%s5852_s4 + $0x40] ss:$16 sps:$4 sm:$0xff]   ;;  %v3811_v8 = vld [vmem:[%s5852_s4 + $0x28] ss:$16 sps:$4 sm:$0xff]   ;;  %v3812_v20 = vld [vmem:[%s5852_s4 + $0x64] ss:$16 sps:$4 sm:$0xff]  }
 0x347   :  { %v4128_v7 = vpop.eup %4127  ;;  %3377 = vmatprep.subr.bf16.mxu0 %v1860_v1  ;;  %3484 = vmatpush3.bf16.msra.mxu1 %v1871_v61  ;;  %4153 = vrcp.f32 %v1641_v14  ;;  %v3815_v47 = vld [vmem:[%s5852_s4 + $0x4c] ss:$16 sps:$4 sm:$0xff]   ;;  %v3814_v27 = vld [vmem:[%s5852_s4 + $0x60] ss:$16 sps:$4 sm:$0xff]   ;;  %v3817_v41 = vld [vmem:[%s5852_s4 + $0x48] ss:$16 sps:$4 sm:$0xff]  }
 0x348   :  { %v4130_v50 = vpop.eup %4129  ;;  %3485 = vmatprep.subr.bf16.mxu1 %v1878_v3  ;;  %4155 = vrcp.f32 %v1642_v22  ;;  %v3818_v1 = vld [vmem:[%s5852_s4 + $0x84] ss:$16 sps:$4 sm:$0xff]   ;;  %v3821_v61 = vld [vmem:[%s5852_s4 + $0x6c] ss:$16 sps:$4 sm:$0xff]   ;;  %v3823_v14 = vld [vmem:[%s5852_s4 + $0x68] ss:$16 sps:$4 sm:$0xff]  }
 0x349   :  { %v4132_v35 = vpop.eup %4131  ;;  %v1859_v49 = vpack.c.bf16 %v4130_v50, %v4126_v23  ;;  %v3820_v23 = vld [vmem:[%s5852_s4 + $0x80] ss:$16 sps:$4 sm:$0xff]   ;;  %v3824_v21 = vld [vmem:[%s5852_s4 + $0xa4] ss:$16 sps:$4 sm:$0xff]   ;;  %v3827_v3 = vld [vmem:[%s5852_s4 + $0x8c] ss:$16 sps:$4 sm:$0xff]  }
 0x34a   :  { %v4134_v57 = vpop.eup %4133  ;;  %3378 = vmatpush3.bf16.msra.mxu0 %v5925_v59  ;;  %v1877_v58 = vpack.c.bf16 %v4132_v35, %v4128_v7  ;;  %v3826_v7 = vld [vmem:[%s5852_s4 + $0xa0] ss:$16 sps:$4 sm:$0xff]   ;;  %v3829_v50 = vld [vmem:[%s5852_s4 + $0x88] ss:$16 sps:$4 sm:$0xff]   ;;  %v3830_v22 = vld [vmem:[%s5852_s4 + $0xc4] ss:$16 sps:$4 sm:$0xff]  }
 0x34b   :  { %v4136_v34 = vpop.eup %4135  ;;  %3379 = vmatprep.subr.bf16.mxu0 %v1859_v49  ;;  %3486 = vmatpush3.bf16.msra.mxu1 %v1870_v28  ;;  %v3833_v35 = vld [vmem:[%s5852_s4 + $0xac] ss:$16 sps:$4 sm:$0xff]   ;;  %v3832_v49 = vld [vmem:[%s5852_s4 + $0xc0] ss:$16 sps:$4 sm:$0xff]   ;;  %v3835_v28 = vld [vmem:[%s5852_s4 + $0xa8] ss:$16 sps:$4 sm:$0xff]  }
 0x34c   :  { %v4138_v43 = vpop.eup %4137  ;;  %3487 = vmatprep.subr.bf16.mxu1 %v1877_v58  ;;  %v3839_v59 = vld [vmem:[%s5852_s4 + $0xcc] ss:$16 sps:$4 sm:$0xff]   ;;  %v3838_v58 = vld [vmem:[%s5852_s4 + $0xe0] ss:$16 sps:$4 sm:$0xff]   ;;  %v3883_v36 = vld [vmem:[%s5852_s4 + $0x1a8] ss:$16 sps:$4 sm:$0xff]  }
 0x34d   :  { %v4140_v63 = vpop.eup %4139  ;;  %v1858_v19 = vpack.c.bf16 %v4138_v43, %v4134_v57  ;;  %v3836_v57 = vld [vmem:[%s5852_s4 + $0xe4] ss:$16 sps:$4 sm:$0xff]   ;;  %v3874_v62 = vld [vmem:[%s5852_s4 + $0x1a0] ss:$16 sps:$4 sm:$0xff]   ;;  %v3889_v26 = vld [vmem:[%s5852_s4 + $0x1c8] ss:$16 sps:$4 sm:$0xff]  }
 0x34e   :  { %v4142_v45 = vpop.eup %4141  ;;  %3380 = vmatpush3.bf16.msra.mxu0 %v5926_v46  ;;  %v1876_v11 = vpack.c.bf16 %v4140_v63, %v4136_v34  ;;  %v3841_v34 = vld [vmem:[%s5852_s4 + $0xc8] ss:$16 sps:$4 sm:$0xff]   ;;  %v3842_v43 = vld [vmem:[%s5852_s4 + $0x104] ss:$16 sps:$4 sm:$0xff]   ;;  %v3845_v63 = vld [vmem:[%s5852_s4 + $0xec] ss:$16 sps:$4 sm:$0xff]  }
 0x34f   :  { %v4144_v0 = vpop.eup %4143  ;;  %3381 = vmatprep.subr.bf16.mxu0 %v1858_v19  ;;  %3488 = vmatpush3.bf16.msra.mxu1 %v1869_v48  ;;  %v3844_v19 = vld [vmem:[%s5852_s4 + $0x100] ss:$16 sps:$4 sm:$0xff]   ;;  %v3847_v48 = vld [vmem:[%s5852_s4 + $0xe8] ss:$16 sps:$4 sm:$0xff]   ;;  %v3851_v46 = vld [vmem:[%s5852_s4 + $0x10c] ss:$16 sps:$4 sm:$0xff]  }
 0x350   :  { %v4146_v60 = vpop.eup %4145  ;;  %3489 = vmatprep.subr.bf16.mxu1 %v1876_v11  ;;  %v3850_v11 = vld [vmem:[%s5852_s4 + $0x120] ss:$16 sps:$4 sm:$0xff]   ;;  %v3884_v54 = vld [vmem:[%s5852_s4 + $0x1e4] ss:$16 sps:$4 sm:$0xff]   ;;  %v3890_v16 = vld [vmem:[%s5852_s4 + $0x1ec] ss:$16 sps:$4 sm:$0xff]  }
 0x351   :  { %v4148_v32 = vpop.eup %4147  ;;  %v1857_v9 = vpack.c.bf16 %v4146_v60, %v4142_v45  ;;  %v3848_v45 = vld [vmem:[%s5852_s4 + $0x124] ss:$16 sps:$4 sm:$0xff]  }
 0x352   :  { %3382 = vmatpush3.bf16.msra.mxu0 %v5929_v40  ;;  %v1875_v5 = vpack.c.bf16 %v4148_v32, %v4144_v0  ;;  %v4150_v38 = vpop.eup %4149  ;;  %v3853_v0 = vld [vmem:[%s5852_s4 + $0x108] ss:$16 sps:$4 sm:$0xff]   ;;  %v3854_v60 = vld [vmem:[%s5852_s4 + $0x144] ss:$16 sps:$4 sm:$0xff]   ;;  %v3857_v32 = vld [vmem:[%s5852_s4 + $0x12c] ss:$16 sps:$4 sm:$0xff]  }
 0x353   :  { %3383 = vmatprep.subr.bf16.mxu0 %v1857_v9  ;;  %3490 = vmatpush3.bf16.msra.mxu1 %v5932_v55  ;;  %v4152_v52 = vpop.eup %4151  ;;  %v3856_v9 = vld [vmem:[%s5852_s4 + $0x140] ss:$16 sps:$4 sm:$0xff]   ;;  %v3863_v40 = vld [vmem:[%s5852_s4 + $0x14c] ss:$16 sps:$4 sm:$0xff]  }
 0x354   :  { %3491 = vmatprep.subr.bf16.mxu1 %v1875_v5  ;;  %v1874_v29 = vpack.c.bf16 %v4152_v52, %v4150_v38  ;;  %v4154_v25 = vpop.eup %4153  ;;  %v3862_v5 = vld [vmem:[%s5852_s4 + $0x160] ss:$16 sps:$4 sm:$0xff]   ;;  %v3865_v38 = vld [vmem:[%s5852_s4 + $0x148] ss:$16 sps:$4 sm:$0xff]  }
 0x355   :  { %v4156_v15 = vpop.eup %4155  ;;  %v3868_v55 = vld [vmem:[%s5852_s4 + $0x180] ss:$16 sps:$4 sm:$0xff]   ;;  %v3871_v52 = vld [vmem:[%s5852_s4 + $0x168] ss:$16 sps:$4 sm:$0xff]  }
 0x356   :  { %3384 = vmatpush3.bf16.msra.mxu0 %v5935_v10  ;;  %v1873_v44 = vpack.c.bf16 %v4156_v15, %v4154_v25  ;;  %v3877_v10 = vld [vmem:[%s5852_s4 + $0x188] ss:$16 sps:$4 sm:$0xff]   ;;  %v3880_v25 = vld [vmem:[%s5852_s4 + $0x1c0] ss:$16 sps:$4 sm:$0xff]   ;;  %v5593_v15 = vpop.permute.xlu1 %1990 }
 0x357   :  { %3492 = vmatpush3.bf16.msra.mxu1 %v5938_v51  ;;  %v3887_v51 = vld [vmem:[%s5852_s4 + $0x1cc] ss:$16 sps:$4 sm:$0xff]  }
 0x358   :  { %3493 = vmatprep.subr.bf16.mxu1 %v1874_v29  ;;  %v3878_v29 = vld [vmem:[%s5852_s4 + $0x1c4] ss:$16 sps:$4 sm:$0xff]  }
 0x359   :  { %2426 = vmatmul.mubr.bf16.vlgmr.msra.gmra.mxu0 %v3797_v18  ;;  %v3872_v18 = vld [vmem:[%s5852_s4 + $0x1a4] ss:$16 sps:$4 sm:$0xff]  }
 0x35a   :  { %2433 = vmatprep.mubr.bf16.mxu0 %v3800_v37  ;;  %v3881_v37 = vld [vmem:[%s5852_s4 + $0x1ac] ss:$16 sps:$4 sm:$0xff]  }
 0x35b   :  { %3494 = vmatpush3.bf16.msra.mxu1 %v5941_v2  ;;  %v5604_v2 = vpop.permute.xlu1 %1985 }
 0x35c   :  { %3495 = vmatprep.subr.bf16.mxu1 %v1873_v44  ;;  %v3886_v44 = vld [vmem:[%s5852_s4 + $0x1e0] ss:$16 sps:$4 sm:$0xff]  }
 0x35f   :  { %3496 = vmatpush3.bf16.msra.mxu1 %v5944_v39 }
 0x361   :  { %2434 = vmatmul.mubr.bf16.gmra.mxu0 %v3802_v33  ;;  %v5606_v33 = vpop.permute.xlu1 %1980 }
 0x362   :  { %2587 = vmatmul.mubr.bf16.vlgmr.msra.gmra.mxu1 %v3803_v17  ;;  %2441 = vmatprep.mubr.bf16.mxu0 %v3806_v12  ;;  %v3892_v17 = vld [vmem:[%s5852_s4 + $0x1e8] ss:$16 sps:$4 sm:$0xff]  }
 0x363   :  { %2594 = vmatprep.mubr.bf16.mxu1 %v3809_v56 }
 0x365   :  { %v5611_v12 = vpop.permute.xlu1 %1975 }
 0x369   :  { %2442 = vmatmul.mubr.bf16.gmra.mxu0 %v3808_v30  ;;  %v5613_v6 = vpop.permute.xlu1 %1970 }
 0x36a   :  { %2595 = vmatmul.mubr.bf16.gmra.mxu1 %v3811_v8  ;;  %2449 = vmatprep.mubr.bf16.mxu0 %v3812_v20 }
 0x36b   :  { %2602 = vmatprep.mubr.bf16.mxu1 %v3815_v47  ;;  %v5627_v47 = vpop.permute.xlu0 %2070 }
 0x36d   :  { %v5615_v31 = vpop.permute.xlu1 %1965 }
 0x371   :  { %2450 = vmatmul.mubr.bf16.gmra.mxu0 %v3814_v27  ;;  %v5617_v39 = vpop.permute.xlu1 %1960 }
 0x372   :  { %2603 = vmatmul.mubr.bf16.gmra.mxu1 %v3817_v41  ;;  %2457 = vmatprep.mubr.bf16.mxu0 %v3818_v1  ;;  %v5629_v41 = vpop.permute.xlu0 %2065 }
 0x373   :  { %2610 = vmatprep.mubr.bf16.mxu1 %v3821_v61 }
 0x375   :  { %v5619_v56 = vpop.permute.xlu1 %1955 }
 0x376   :  { %v5631_v61 = vpop.permute.xlu0 %2060 }
 0x379   :  { %2458 = vmatmul.mubr.bf16.gmra.mxu0 %v3820_v23  ;;  %v5621_v30 = vpop.permute.xlu1 %1950 }
 0x37a   :  { %2611 = vmatmul.mubr.bf16.gmra.mxu1 %v3823_v14  ;;  %2465 = vmatprep.mubr.bf16.mxu0 %v3824_v21 }
 0x37b   :  { %2618 = vmatprep.mubr.bf16.mxu1 %v3827_v3  ;;  %v5633_v3 = vpop.permute.xlu0 %2055 }
 0x37d   :  { %v5623_v8 = vpop.permute.xlu1 %1945 }
 0x381   :  { %2466 = vmatmul.mubr.bf16.gmra.mxu0 %v3826_v7  ;;  %v5625_v20 = vpop.permute.xlu1 %1940 }
 0x382   :  { %2619 = vmatmul.mubr.bf16.gmra.mxu1 %v3829_v50  ;;  %2473 = vmatprep.mubr.bf16.mxu0 %v3830_v22 }
 0x383   :  { %2626 = vmatprep.mubr.bf16.mxu1 %v3833_v35 }
 0x385   :  { %v1936_v27 = vpop.permute.xlu1 %1935 }
 0x389   :  { %2474 = vmatmul.mubr.bf16.gmra.mxu0 %v3832_v49  ;;  %v1931_v1 = vpop.permute.xlu1 %1930 }
 0x38a   :  { %2627 = vmatmul.mubr.bf16.gmra.mxu1 %v3835_v28  ;;  %2481 = vmatprep.mubr.bf16.mxu0 %v3836_v57  ;;  %v5635_v57 = vpop.permute.xlu0 %2050 }
 0x38b   :  { %2634 = vmatprep.mubr.bf16.mxu1 %v3839_v59 }
 0x38d   :  { %v1926_v23 = vpop.permute.xlu1 %1925 }
 0x391   :  { %2482 = vmatmul.mubr.bf16.gmra.mxu0 %v3838_v58  ;;  %v1921_v22 = vpop.permute.xlu1 %1920 }
 0x392   :  { %2635 = vmatmul.mubr.bf16.gmra.mxu1 %v3841_v34  ;;  %2489 = vmatprep.mubr.bf16.mxu0 %v3842_v43 }
 0x393   :  { %2642 = vmatprep.mubr.bf16.mxu1 %v3845_v63 }
 0x395   :  { %v1916_v34 = vpop.permute.xlu1 %1915 }
 0x399   :  { %2490 = vmatmul.mubr.bf16.gmra.mxu0 %v3844_v19 }
 0x39a   :  { %2643 = vmatmul.mubr.bf16.gmra.mxu1 %v3847_v48  ;;  %2497 = vmatprep.mubr.bf16.mxu0 %v3848_v45 }
 0x39b   :  { %2650 = vmatprep.mubr.bf16.mxu1 %v3851_v46 }
 0x3a1   :  { %2498 = vmatmul.mubr.bf16.gmra.mxu0 %v3850_v11 }
 0x3a2   :  { %2651 = vmatmul.mubr.bf16.gmra.mxu1 %v3853_v0  ;;  %2505 = vmatprep.mubr.bf16.mxu0 %v3854_v60  ;;  %v5639_v60 = vpop.permute.xlu0 %2045 }
 0x3a3   :  { %2658 = vmatprep.mubr.bf16.mxu1 %v3857_v32 }
 0x3a9   :  { %2506 = vmatmul.mubr.bf16.gmra.mxu0 %v3856_v9 }
 0x3aa   :  { %2659 = vmatmul.mubr.bf16.gmra.mxu1 %v3859_v4  ;;  %2513 = vmatprep.mubr.bf16.mxu0 %v3860_v13 }
 0x3ab   :  { %2666 = vmatprep.mubr.bf16.mxu1 %v3863_v40 }
 0x3b1   :  { %2514 = vmatmul.mubr.bf16.gmra.mxu0 %v3862_v5 }
 0x3b2   :  { %2667 = vmatmul.mubr.bf16.gmra.mxu1 %v3865_v38  ;;  %2521 = vmatprep.mubr.bf16.mxu0 %v3866_v53 }
 0x3b3   :  { %2674 = vmatprep.mubr.bf16.mxu1 %v3869_v24 }
 0x3b9   :  { %2522 = vmatmul.mubr.bf16.gmra.mxu0 %v3868_v55 }
 0x3ba   :  { %2675 = vmatmul.mubr.bf16.gmra.mxu1 %v3871_v52  ;;  %2529 = vmatprep.mubr.bf16.mxu0 %v3872_v18 }
 0x3bb   :  { %2682 = vmatprep.mubr.bf16.mxu1 %v3875_v42 }
 0x3c1   :  { %2530 = vmatmul.mubr.bf16.gmra.mxu0 %v3874_v62  ;;  %v5643_v62 = vpop.permute.xlu0 %2040 }
 0x3c2   :  { %2683 = vmatmul.mubr.bf16.gmra.mxu1 %v3877_v10  ;;  %2537 = vmatprep.mubr.bf16.mxu0 %v3878_v29 }
 0x3c3   :  { %2690 = vmatprep.mubr.bf16.mxu1 %v3881_v37 }
 0x3c9   :  { %2538 = vmatmul.mubr.bf16.gmra.mxu0 %v3880_v25 }
 0x3ca   :  { %2691 = vmatmul.mubr.bf16.gmra.mxu1 %v3883_v36  ;;  %2545 = vmatprep.mubr.bf16.mxu0 %v3884_v54 }
 0x3cb   :  { %2698 = vmatprep.mubr.bf16.mxu1 %v3887_v51 }
 0x3d1   :  { %2546 = vmatmul.mubr.bf16.gmra.mxu0 %v3886_v44 }
 0x3d2   :  { %2699 = vmatmul.mubr.bf16.gmra.mxu1 %v3889_v26 }
 0x3d3   :  { %2706 = vmatprep.mubr.bf16.mxu1 %v3890_v16 }
 0x3da   :  { %2707 = vmatmul.mubr.bf16.gmra.mxu1 %v3892_v17 }
 0x419   :  { %v3385_v14 = vpop.f32.mrf.mxu0 }
 0x41b   :  { %v3386_v21 = vpop.f32.mrf.mxu0 }
 0x41c   :  { %v3387_v7 = vadd.f32 %v3386_v21, %v3385_v14  ;;  %v5649_v14 = vpop.permute.xlu0 %2035 }
 0x41d   :  { %v3388_v50 = vpop.f32.mrf.mxu0 }
 0x41e   :  { %v2428_v19 = vadd.f32 %v3387_v7, %v1916_v34 }
 0x41f   :  { %v3389_v35 = vpop.f32.mrf.mxu0 }
 0x420   :  { %v3390_v49 = vadd.f32 %v3389_v35, %v3388_v50 }
 0x421   :  { %v3391_v28 = vpop.f32.mrf.mxu0 }
 0x422   :  { %v3497_v59 = vpop.f32.mrf.mxu1  ;;  %v2431_v4 = vadd.f32 %v3390_v49, %v1921_v22 }
 0x423   :  { %v3392_v58 = vpop.f32.mrf.mxu0 }
 0x424   :  { %v3393_v43 = vadd.f32 %v3392_v58, %v3391_v28  ;;  %v3498_v63 = vpop.f32.mrf.mxu1 }
 0x425   :  { %v3394_v48 = vpop.f32.mrf.mxu0  ;;  %v3499_v45 = vadd.f32 %v3498_v63, %v3497_v59  ;;  %v5654_v63 = vpop.permute.xlu0 %2030 }
 0x426   :  { %v3500_v46 = vpop.f32.mrf.mxu1  ;;  %v2436_v52 = vadd.f32 %v3393_v43, %v1926_v23  ;;  %5945 = vst [vmem:[#allocation17_spill] sm:$0xff] %v5654_v63 }
 0x427   :  { %v3395_v11 = vpop.f32.mrf.mxu0  ;;  %v5637_v0 = vadd.f32 %v3499_v45, %v2428_v19 }
 0x428   :  { %v3396_v32 = vadd.f32 %v3395_v11, %v3394_v48  ;;  %v3501_v9 = vpop.f32.mrf.mxu1 }
 0x429   :  { %v3397_v13 = vpop.f32.mrf.mxu0  ;;  %v3502_v40 = vadd.f32 %v3501_v9, %v3500_v46 }
 0x42a   :  { %v3503_v5 = vpop.f32.mrf.mxu1  ;;  %v2439_v54 = vadd.f32 %v3396_v32, %v1931_v1 }
 0x42b   :  { %v3398_v38 = vpop.f32.mrf.mxu0  ;;  %v5641_v53 = vadd.f32 %v3502_v40, %v2431_v4 }
 0x42c   :  { %v3399_v24 = vadd.f32 %v3398_v38, %v3397_v13  ;;  %v3504_v55 = vpop.f32.mrf.mxu1 }
 0x42d   :  { %v3400_v18 = vpop.f32.mrf.mxu0  ;;  %v3505_v42 = vadd.f32 %v3504_v55, %v3503_v5  ;;  %v5661_v5 = vpop.permute.xlu0 %2025 }
 0x42e   :  { %v3506_v10 = vpop.f32.mrf.mxu1  ;;  %v2444_v7 = vadd.f32 %v3399_v24, %v1936_v27  ;;  %5946 = vst [vmem:[#allocation13_spill] sm:$0xff] %v5661_v5 }
 0x42f   :  { %v3401_v29 = vpop.f32.mrf.mxu0  ;;  %v5645_v37 = vadd.f32 %v3505_v42, %v2436_v52 }
 0x430   :  { %v3402_v25 = vadd.f32 %v3401_v29, %v3400_v18  ;;  %v3507_v36 = vpop.f32.mrf.mxu1 }
 0x431   :  { %v3403_v51 = vpop.f32.mrf.mxu0  ;;  %v3508_v44 = vadd.f32 %v3507_v36, %v3506_v10 }
 0x432   :  { %v3509_v26 = vpop.f32.mrf.mxu1  ;;  %v2447_v1 = vadd.f32 %v3402_v25, %v5625_v20 }
 0x433   :  { %v3404_v16 = vpop.f32.mrf.mxu0  ;;  %v5647_v17 = vadd.f32 %v3508_v44, %v2439_v54 }
 0x434   :  { %v3405_v23 = vadd.f32 %v3404_v16, %v3403_v51  ;;  %v3510_v21 = vpop.f32.mrf.mxu1  ;;  %v5667_v51 = vpop.permute.xlu0 %2020 }
 0x435   :  { %v3406_v50 = vpop.f32.mrf.mxu0  ;;  %v3511_v22 = vadd.f32 %v3510_v21, %v3509_v26  ;;  %5947 = vst [vmem:[#allocation14_spill] sm:$0xff] %v5667_v51  ;;  %v3237_v51 = vmul.f32 -1.442695, %v5647_v17 }
 0x436   :  { %v3512_v35 = vpop.f32.mrf.mxu1  ;;  %v2452_v11 = vadd.f32 %v3405_v23, %v5623_v8 }
 0x437   :  { %v3407_v49 = vpop.f32.mrf.mxu0  ;;  %v5651_v28 = vadd.f32 %v3511_v22, %v2444_v7 }
 0x438   :  { %v3408_v59 = vadd.f32 %v3407_v49, %v3406_v50  ;;  %v3513_v58 = vpop.f32.mrf.mxu1 }
 0x439   :  { %v3409_v34 = vpop.f32.mrf.mxu0  ;;  %v3514_v43 = vadd.f32 %v3513_v58, %v3512_v35 }
 0x43a   :  { %v3515_v19 = vpop.f32.mrf.mxu1  ;;  %v2455_v24 = vadd.f32 %v3408_v59, %v5621_v30  ;;  %v5674_v59 = vpop.permute.xlu0 %2015 }
 0x43b   :  { %v3410_v48 = vpop.f32.mrf.mxu0  ;;  %v5656_v45 = vadd.f32 %v3514_v43, %v2447_v1 }
 0x43c   :  { %v3411_v46 = vadd.f32 %v3410_v48, %v3409_v34  ;;  %v3516_v27 = vpop.f32.mrf.mxu1 }
 0x43d   :  { %v3412_v32 = vpop.f32.mrf.mxu0  ;;  %v3517_v9 = vadd.f32 %v3516_v27, %v3515_v19 }
 0x43e   :  { %v3518_v4 = vpop.f32.mrf.mxu1  ;;  %v2460_v25 = vadd.f32 %v3411_v46, %v5619_v56 }
 0x43f   :  { %v3413_v13 = vpop.f32.mrf.mxu0  ;;  %v5659_v40 = vadd.f32 %v3517_v9, %v2452_v11 }
 0x440   :  { %v3414_v20 = vadd.f32 %v3413_v13, %v3412_v32  ;;  %v3519_v38 = vpop.f32.mrf.mxu1 }
 0x441   :  { %v3415_v55 = vpop.f32.mrf.mxu0  ;;  %v3520_v52 = vadd.f32 %v3519_v38, %v3518_v4  ;;  %v5680_v4 = vpop.permute.xlu0 %2010 }
 0x442   :  { %v3521_v18 = vpop.f32.mrf.mxu1  ;;  %v2463_v21 = vadd.f32 %v3414_v20, %v5617_v39 }
 0x443   :  { %v3416_v42 = vpop.f32.mrf.mxu0  ;;  %v5664_v10 = vadd.f32 %v3520_v52, %v2455_v24 }
 0x444   :  { %v3417_v29 = vadd.f32 %v3416_v42, %v3415_v55  ;;  %v3522_v8 = vpop.f32.mrf.mxu1 }
 0x445   :  { %v3418_v36 = vpop.f32.mrf.mxu0  ;;  %v3523_v54 = vadd.f32 %v3522_v8, %v3521_v18 }
 0x446   :  { %v3524_v44 = vpop.f32.mrf.mxu1  ;;  %v2468_v1 = vadd.f32 %v3417_v29, %v5615_v31 }
 0x447   :  { %v3419_v26 = vpop.f32.mrf.mxu0  ;;  %v5669_v16 = vadd.f32 %v3523_v54, %v2460_v25  ;;  %v2006_v25 = vpop.permute.xlu0 %2005 }
 0x448   :  { %v3420_v23 = vadd.f32 %v3419_v26, %v3418_v36  ;;  %v3525_v30 = vpop.f32.mrf.mxu1 }
 0x449   :  { %v3421_v7 = vpop.f32.mrf.mxu0  ;;  %v3526_v50 = vadd.f32 %v3525_v30, %v3524_v44 }
 0x44a   :  { %v3527_v22 = vpop.f32.mrf.mxu1  ;;  %v2471_v11 = vadd.f32 %v3420_v23, %v5613_v6 }
 0x44b   :  { %v3422_v35 = vpop.f32.mrf.mxu0  ;;  %v5672_v49 = vadd.f32 %v3526_v50, %v2463_v21 }
 0x44c   :  { %v3423_v56 = vadd.f32 %v3422_v35, %v3421_v7  ;;  %v3528_v58 = vpop.f32.mrf.mxu1 }
 0x44d   :  { %v3424_v34 = vpop.f32.mrf.mxu0  ;;  %v3529_v43 = vadd.f32 %v3528_v58, %v3527_v22 }
 0x44e   :  { %v3530_v19 = vpop.f32.mrf.mxu1  ;;  %v2476_v55 = vadd.f32 %v3423_v56, %v5611_v12  ;;  %v2001_v56 = vpop.permute.xlu0 %2000 }
 0x44f   :  { %v3425_v48 = vpop.f32.mrf.mxu0  ;;  %v5677_v46 = vadd.f32 %v3529_v43, %v2468_v1 }
 0x450   :  { %v3426_v27 = vadd.f32 %v3425_v48, %v3424_v34  ;;  %v3531_v39 = vpop.f32.mrf.mxu1 }
 0x451   :  { %v3427_v32 = vpop.f32.mrf.mxu0  ;;  %v3532_v9 = vadd.f32 %v3531_v39, %v3530_v19 }
 0x452   :  { %v3533_v13 = vpop.f32.mrf.mxu1  ;;  %v2479_v54 = vadd.f32 %v3426_v27, %v5606_v33 }
 0x453   :  { %v3428_v20 = vpop.f32.mrf.mxu0  ;;  %v5682_v38 = vadd.f32 %v3532_v9, %v2471_v11  ;;  %v1996_v9 = vpop.permute.xlu0 %1995 }
 0x454   :  { %v3429_v24 = vadd.f32 %v3428_v20, %v3427_v32  ;;  %v3534_v31 = vpop.f32.mrf.mxu1  ;;  %v5948_v20 = vld [vmem:[#allocation5_spill] sm:$0xff] }
 0x455   :  { %v3430_v52 = vpop.f32.mrf.mxu0  ;;  %v3535_v18 = vadd.f32 %v3534_v31, %v3533_v13 }
 0x456   :  { %v3536_v42 = vpop.f32.mrf.mxu1  ;;  %v2484_v12 = vadd.f32 %v3429_v24, %v5604_v2  ;;  %v2921_v24 = vsub.s32 1, %v5948_v20  ;;  %v3234_v20 = vmul.f32 -1.442695, %v5637_v0  ;;  %v3239_v0 = vmul.f32 -1.442695, %v5656_v45 }
 0x457   :  { %v3431_v29 = vpop.f32.mrf.mxu0  ;;  %v5685_v8 = vadd.f32 %v3535_v18, %v2476_v55  ;;  %v5700_v18 = vld [vmem:[%s5853_s5] sm:$0x3]  ;;  %s4312_s5 = smov [#allocation2]  }
 0x458   :  { %v3432_v6 = vadd.f32 %v3431_v29, %v3430_v52  ;;  %v3537_v36 = vpop.f32.mrf.mxu1  ;;  %5949 = vst [vmem:[#allocation10_spill] sm:$0xff] %v5700_v18  ;;  %4157 = vpow2.f32 %v3234_v20  ;;  %s3014_s22 = sshll.u32 %s4312_s5, 4  ;;  %s3015_s22 = int_to_ptr.vmem [resolvable:$true] %s3014_s22 }
 0x459   :  { %v3433_v44 = vpop.f32.mrf.mxu0  ;;  %v3538_v26 = vadd.f32 %v3537_v36, %v3536_v42  ;;  %v2922_v42 = vrot.slane %v5700_v18, %v2921_v24  ;;  %s4289_s23 = scalar_lea.vmem %s3015_s22, 16  ;;  %s4293_s24 = scalar_lea.vmem %s3015_s22, 32 }
 0x45a   :  { %v3539_v23 = vpop.f32.mrf.mxu1  ;;  %v2487_v33 = vadd.f32 %v3432_v6, %v5593_v15  ;;  %p4290_p0 = scmp.ne.s32.totalorder %s3015_s22, %s4289_s23  ;;  %p4294_p1 = scmp.lt.s32.totalorder %s3015_s22, %s3015_s22 }
 0x45b   :  { %v3434_v30 = vpop.f32.mrf.mxu0  ;;  %v5688_v21 = vadd.f32 %v3538_v26, %v2479_v54  ;;  %2989 = vmatprep.mubr.f32.mxu0 %v2922_v42  ;;  %p4295_p2 = scmp.lt.s32.totalorder %s4293_s24, %s4289_s23 }
 0x45c   :  { %v3435_v7 = vadd.f32 %v3434_v30, %v3433_v44  ;;  %v3540_v50 = vpop.f32.mrf.mxu1 }
 0x45d   :  { %v3436_v22 = vpop.f32.mrf.mxu0  ;;  %v3541_v35 = vadd.f32 %v3540_v50, %v3539_v23  ;;  %p4296_p3 = por %p4295_p2, %p4294_p1 }
 0x45e   :  { %v3542_v58 = vpop.f32.mrf.mxu1  ;;  %v2492_v31 = vadd.f32 %v3435_v7, %v1996_v9 }
 0x45f   :  { %v3437_v1 = vpop.f32.mrf.mxu0  ;;  %v5691_v34 = vadd.f32 %v3541_v35, %v2484_v12  ;;  %p4297_p4 = pnand %p4296_p3, %p4290_p0 }
 0x460   :  { %v3438_v43 = vadd.f32 %v3437_v1, %v3436_v22  ;;  %v3543_v19 = vpop.f32.mrf.mxu1 }
 0x461   :  { %v3439_v48 = vpop.f32.mrf.mxu0  ;;  %v3544_v27 = vadd.f32 %v3543_v19, %v3542_v58  ;;  %v3248_v45 = vmul.f32 -1.442695, %v5691_v34 }
 0x462   :  { %v3545_v39 = vpop.f32.mrf.mxu1  ;;  %v2495_v44 = vadd.f32 %v3438_v43, %v2001_v56 }
 0x463   :  { %v3440_v11 = vpop.f32.mrf.mxu0  ;;  %v5694_v32 = vadd.f32 %v3544_v27, %v2487_v33 }
 0x464   :  { %v3441_v13 = vadd.f32 %v3440_v11, %v3439_v48  ;;  %v3546_v2 = vpop.f32.mrf.mxu1 }
 0x465   :  { %v3442_v55 = vpop.f32.mrf.mxu0  ;;  %v3547_v52 = vadd.f32 %v3546_v2, %v3545_v39 }
 0x466   :  { %v3548_v15 = vpop.f32.mrf.mxu1  ;;  %v2500_v35 = vadd.f32 %v3441_v13, %v2006_v25 }
 0x467   :  { %v3443_v29 = vpop.f32.mrf.mxu0  ;;  %v5703_v6 = vadd.f32 %v3547_v52, %v2492_v31 }
 0x468   :  { %v3444_v36 = vadd.f32 %v3443_v29, %v3442_v55  ;;  %v3549_v54 = vpop.f32.mrf.mxu1 }
 0x469   :  { %5950 = vst [vmem:[#allocation18_spill] sm:$0xff] %v5703_v6  ;;  %v3445_v26 = vpop.f32.mrf.mxu0  ;;  %v3550_v23 = vadd.f32 %v3549_v54, %v3548_v15 }
 0x46a   :  { %v3551_v30 = vpop.f32.mrf.mxu1  ;;  %v2503_v56 = vadd.f32 %v3444_v36, %v5680_v4 }
 0x46b   :  { %v3446_v7 = vpop.f32.mrf.mxu0  ;;  %v5705_v50 = vadd.f32 %v3550_v23, %v2495_v44 }
 0x46c   :  { %v3447_v12 = vadd.f32 %v3446_v7, %v3445_v26  ;;  %v3552_v22 = vpop.f32.mrf.mxu1 }
 0x46d   :  { %5951 = vst [vmem:[#allocation9_spill] sm:$0xff] %v5705_v50  ;;  %v5707_v58 = vpop.f32.mrf.mxu0  ;;  %v3553_v1 = vadd.f32 %v3552_v22, %v3551_v30  ;;  %v3235_v50 = vmul.f32 -1.442695, %v5641_v53  ;;  %v3246_v53 = vmul.f32 -1.442695, %v5685_v8 }
 0x46e   :  { %v3554_v19 = vpop.f32.mrf.mxu1  ;;  %v2508_v13 = vadd.f32 %v3447_v12, %v5674_v59 }
 0x46f   :  { %v5709_v33 = vpop.f32.mrf.mxu0  ;;  %v5711_v48 = vadd.f32 %v3553_v1, %v2500_v35  ;;  %4159 = vpow2.f32 %v3235_v50 }
 0x470   :  { %5952 = vst [vmem:[#allocation15_spill] sm:$0xff] %v5709_v33  ;;  %v3555_v27 = vpop.f32.mrf.mxu1 }
 0x471   :  { %5953 = vst [vmem:[#allocation12_spill] sm:$0xff] %v5711_v48  ;;  %v5714_v43 = vpop.f32.mrf.mxu0  ;;  %v3556_v39 = vadd.f32 %v3555_v27, %v3554_v19 }
 0x472   :  { %v3557_v11 = vpop.f32.mrf.mxu1 }
 0x473   :  { %v5716_v9 = vpop.f32.mrf.mxu0  ;;  %v5718_v2 = vadd.f32 %v3556_v39, %v2503_v56 }
 0x474   :  { %v3558_v25 = vpop.f32.mrf.mxu1 }
 0x475   :  { %5954 = vst [vmem:[#allocation11_spill] sm:$0xff] %v5718_v2  ;;  %v5721_v24 = vpop.f32.mrf.mxu0  ;;  %v3559_v31 = vadd.f32 %v3558_v25, %v3557_v11  ;;  %v3236_v2 = vmul.f32 -1.442695, %v5645_v37  ;;  %v3247_v37 = vmul.f32 -1.442695, %v5688_v21 }
 0x476   :  { %v5723_v55 = vpop.f32.mrf.mxu1 }
 0x477   :  { %5955 = vst [vmem:[#allocation8_spill] sm:$0xff] %v5723_v55  ;;  %v5725_v52 = vpop.f32.mrf.mxu0  ;;  %v5727_v15 = vadd.f32 %v3559_v31, %v2508_v13  ;;  %4161 = vpow2.f32 %v3236_v2 }
 0x478   :  { %v5729_v4 = vpop.f32.mrf.mxu1  ;;  %4163 = vpow2.f32 %v3237_v51  ;;  %v3249_v51 = vmul.f32 -1.442695, %v5694_v32 }
 0x479   :  { %5956 = vst [vmem:[#allocation7_spill] sm:$0xff] %v5727_v15  ;;  %5957 = vst [vmem:[#allocation23_spill] sm:$0xff] %v5729_v4  ;;  %v5731_v42 = vpop.f32.mrf.mxu0  ;;  %v3238_v4 = vmul.f32 -1.442695, %v5651_v28  ;;  %v3240_v28 = vmul.f32 -1.442695, %v5659_v40 }
 0x47a   :  { %v5733_v29 = vpop.f32.mrf.mxu1 }
 0x47b   :  { %5958 = vst [vmem:[#allocation16_spill] sm:$0xff] %v5733_v29  ;;  %v5735_v36 = vpop.f32.mrf.mxu0  ;;  %4165 = vpow2.f32 %v3238_v4 }
 0x47c   :  { %v5737_v54 = vpop.f32.mrf.mxu1 }
 0x47d   :  { %5959 = vst [vmem:[#allocation19_spill] sm:$0xff] %v5737_v54  ;;  %v5739_v59 = vpop.f32.mrf.mxu0  ;;  %v3245_v54 = vmul.f32 -1.442695, %v5682_v38 }
 0x47e   :  { %v5741_v44 = vpop.f32.mrf.mxu1 }
 0x47f   :  { %v5743_v26 = vpop.f32.mrf.mxu0  ;;  %4167 = vpow2.f32 %v3245_v54 }
 0x480   :  { %v5745_v23 = vpop.f32.mrf.mxu1  ;;  %4169 = vpow2.f32 %v3239_v0  ;;  %v3241_v0 = vmul.f32 -1.442695, %v5664_v10 }
 0x481   :  { %v5747_v30 = vpop.f32.mrf.mxu0  ;;  %4171 = vpow2.f32 %v3246_v53  ;;  %v3242_v53 = vmul.f32 -1.442695, %v5669_v16 }
 0x482   :  { %v5749_v7 = vpop.f32.mrf.mxu1  ;;  %4173 = vpow2.f32 %v3247_v37 }
 0x483   :  { %v3464_v12 = vpop.f32.mrf.mxu0  ;;  %4175 = vpow2.f32 %v3240_v28 }
 0x484   :  { %v5751_v22 = vpop.f32.mrf.mxu1  ;;  %4177 = vpow2.f32 %v3248_v45  ;;  %v3465_v32 = vadd.f32 %v3464_v12, %v5747_v30  ;;  %v3459_v12 = vadd.f32 %v5735_v36, %v5731_v42 }
 0x485   :  { %v3466_v35 = vpop.f32.mrf.mxu0  ;;  %4179 = vpow2.f32 %v3249_v51  ;;  %v5962_v51 = vld [vmem:[#allocation16_spill] sm:$0xff] }
 0x486   :  { %v5753_v1 = vpop.f32.mrf.mxu1  ;;  %4181 = vpow2.f32 %v3241_v0  ;;  %v5967_v0 = vld [vmem:[#allocation14_spill] sm:$0xff] }
 0x487   :  { %v3467_v19 = vpop.f32.mrf.mxu0  ;;  %4183 = vpow2.f32 %v3242_v53 }
 0x488   :  { %v5755_v27 = vpop.f32.mrf.mxu1 }
 0x489   :  { %v3469_v56 = vpop.f32.mrf.mxu0 }
 0x48a   :  { %v5757_v39 = vpop.f32.mrf.mxu1 }
 0x48b   :  { %v3470_v11 = vpop.f32.mrf.mxu0 }
 0x48c   :  { %v5759_v25 = vpop.f32.mrf.mxu1  ;;  %v3471_v8 = vadd.f32 %v3470_v11, %v3469_v56 }
 0x48d   :  { %v3472_v13 = vpop.f32.mrf.mxu0  ;;  %v3577_v16 = vadd.f32 %v5759_v25, %v5757_v39  ;;  %v3243_v25 = vmul.f32 -1.442695, %v5672_v49  ;;  %v3453_v49 = vadd.f32 %v5716_v9, %v5714_v43  ;;  %v5963_v43 = vld [vmem:[#allocation19_spill] sm:$0xff] }
 0x48e   :  { %v3578_v31 = vpop.f32.mrf.mxu1  ;;  %v2540_v56 = vadd.f32 %v3471_v8, %v5633_v3  ;;  %v3565_v9 = vadd.f32 %v5963_v43, %v5962_v51 }
 0x48f   :  { %v3473_v18 = vpop.f32.mrf.mxu0 }
 0x490   :  { %v3579_v6 = vpop.f32.mrf.mxu1  ;;  %v3474_v20 = vadd.f32 %v3473_v18, %v3472_v13 }
 0x491   :  { %v3475_v48 = vpop.f32.mrf.mxu0 }
 0x492   :  { %v3581_v15 = vpop.f32.mrf.mxu1  ;;  %v2543_v21 = vadd.f32 %v3474_v20, %v5631_v61  ;;  %v3580_v61 = vadd.f32 %v3579_v6, %v3578_v31  ;;  %v3456_v31 = vadd.f32 %v5725_v52, %v5721_v24 }
 0x493   :  { %v3476_v5 = vpop.f32.mrf.mxu0 }
 0x494   :  { %v3582_v55 = vpop.f32.mrf.mxu1  ;;  %v3477_v33 = vadd.f32 %v3476_v5, %v3475_v48  ;;  %v3468_v48 = vadd.f32 %v3467_v19, %v3466_v35 }
 0x495   :  { %v3478_v29 = vpop.f32.mrf.mxu0  ;;  %v3583_v40 = vadd.f32 %v3582_v55, %v3581_v15 }
 0x496   :  { %v3584_v63 = vpop.f32.mrf.mxu1  ;;  %v2548_v54 = vadd.f32 %v3477_v33, %v5629_v41  ;;  %v5779_v41 = vpop.eup %4157  ;;  %v3462_v33 = vadd.f32 %v5743_v26, %v5739_v59 }
 0x497   :  { %v3479_v50 = vpop.f32.mrf.mxu0  ;;  %v5784_v15 = vpop.eup %4159  ;;  %v2701_v30 = vadd.f32 %v3583_v40, %v2540_v56 }
 0x498   :  { %v3585_v17 = vpop.f32.mrf.mxu1  ;;  %v3480_v18 = vadd.f32 %v3479_v50, %v3478_v29  ;;  %v2535_v29 = vadd.f32 %v3468_v48, %v5635_v57  ;;  %v5789_v6 = vpop.eup %4161  ;;  %v3574_v57 = vadd.f32 %v5755_v27, %v5753_v1  ;;  %v2527_v42 = vadd.f32 %v3462_v33, %v5643_v62 }
 0x499   :  { %v3586_v2 = vadd.f32 %v3585_v17, %v3584_v63  ;;  %v5793_v26 = vpop.eup %4163  ;;  %v3571_v17 = vadd.f32 %v5751_v22, %v5749_v7  ;;  %v3244_v1 = vmul.f32 -1.442695, %v5677_v46  ;;  %v2524_v27 = vadd.f32 %v3459_v12, %v5649_v14  ;;  %v5961_v46 = vld [vmem:[#allocation17_spill] sm:$0xff] }
 0x49a   :  { %v3587_v38 = vpop.f32.mrf.mxu1  ;;  %v2551_v55 = vadd.f32 %v3480_v18, %v5627_v47  ;;  %v2532_v47 = vadd.f32 %v3465_v32, %v5639_v60  ;;  %v2696_v19 = vadd.f32 %v3580_v61, %v2535_v29  ;;  %v5798_v39 = vpop.eup %4165  ;;  %v3262_v60 = vmul.f32 -1.442695, %v2701_v30 }
 0x49b   :  { %v2704_v34 = vadd.f32 %v3586_v2, %v2543_v21  ;;  %v4168_v37 = vpop.eup %4167  ;;  %v3568_v62 = vadd.f32 %v5745_v23, %v5741_v44  ;;  %v2688_v52 = vadd.f32 %v3574_v57, %v2527_v42  ;;  %v2519_v2 = vadd.f32 %v3456_v31, %v5961_v46  ;;  %v5964_v23 = vld [vmem:[#allocation8_spill] sm:$0xff]  ;;  %v5965_v21 = vld [vmem:[#allocation23_spill] sm:$0xff] }
 0x49c   :  { %v3588_v4 = vpop.f32.mrf.mxu1  ;;  %v2693_v20 = vadd.f32 %v3577_v16, %v2532_v47  ;;  %v5806_v28 = vpop.eup %4169  ;;  %v3261_v50 = vmul.f32 -1.442695, %v2696_v19  ;;  %v2822_v22 = vadd.f32 1.0, %v4168_v37  ;;  %v2685_v14 = vadd.f32 %v3571_v17, %v2524_v27  ;;  %v5969_v31 = vld [vmem:[#allocation11_spill] sm:$0xff] }
 0x49d   :  { %v3589_v5 = vadd.f32 %v3588_v4, %v3587_v38  ;;  %v3263_v35 = vmul.f32 -1.442695, %v2704_v34  ;;  %v4172_v24 = vpop.eup %4171  ;;  %v5960_v38 = vld [vmem:[#allocation15_spill] sm:$0xff]  ;;  %v2680_v40 = vadd.f32 %v3568_v62, %v2519_v2  ;;  %v3253_v42 = vmul.f32 -1.442695, %v5969_v31 }
 0x49e   :  { %v3590_v13 = vpop.f32.mrf.mxu1  ;;  %v4174_v7 = vpop.eup %4173  ;;  %v3450_v45 = vadd.f32 %v5960_v38, %v5707_v58  ;;  %v3260_v8 = vmul.f32 -1.442695, %v2693_v20  ;;  %v2823_v44 = vadd.f32 1.0, %v4172_v24  ;;  %v3259_v58 = vmul.f32 -1.442695, %v2688_v52  ;;  %v5970_v20 = vld [vmem:[#allocation12_spill] sm:$0xff] }
 0x49f   :  { %v2709_v63 = vadd.f32 %v3589_v5, %v2548_v54  ;;  %v5819_v4 = vpop.eup %4175  ;;  %v3562_v54 = vadd.f32 %v5965_v21, %v5964_v23  ;;  %v5966_v5 = vld [vmem:[#allocation13_spill] sm:$0xff]  ;;  %v3258_v32 = vmul.f32 -1.442695, %v2685_v14  ;;  %v3257_v33 = vmul.f32 -1.442695, %v2680_v40 }
 0x4a0   :  { %v3591_v11 = vpop.f32.mrf.mxu1  ;;  %v4178_v18 = vpop.eup %4177  ;;  %v2516_v48 = vadd.f32 %v3453_v49, %v5966_v5  ;;  %v2511_v34 = vadd.f32 %v3450_v45, %v5967_v0  ;;  %v5971_v24 = vld [vmem:[#allocation9_spill] sm:$0xff] }
 0x4a1   :  { %v3592_v10 = vadd.f32 %v3591_v11, %v3590_v13  ;;  %v3264_v3 = vmul.f32 -1.442695, %v2709_v63  ;;  %v2824_v13 = vadd.f32 1.0, %v4174_v7  ;;  %v4180_v63 = vpop.eup %4179  ;;  %v2825_v56 = vadd.f32 1.0, %v4178_v18 }
 0x4a2   :  { %v2677_v53 = vadd.f32 %v3565_v9, %v2516_v48  ;;  %v2672_v61 = vadd.f32 %v3562_v54, %v2511_v34  ;;  %v4182_v11 = vpop.eup %4181  ;;  %v3251_v62 = vmul.f32 -1.442695, %v5971_v24  ;;  %v2817_v34 = vadd.f32 1.0, %v5819_v4 }
 0x4a3   :  { %v2712_v59 = vadd.f32 %v3592_v10, %v2551_v55  ;;  %4185 = vpow2.f32 %v3264_v3  ;;  %v4184_v55 = vpop.eup %4183  ;;  %v2826_v10 = vadd.f32 1.0, %v4180_v63  ;;  %v2818_v40 = vadd.f32 1.0, %v4182_v11 }
 0x4a4   :  { %4187 = vpow2.f32 %v3263_v35  ;;  %v3256_v29 = vmul.f32 -1.442695, %v2677_v53  ;;  %v3255_v30 = vmul.f32 -1.442695, %v2672_v61  ;;  %v5968_v35 = vld [vmem:[#allocation7_spill] sm:$0xff]  ;;  %v2819_v54 = vadd.f32 1.0, %v4184_v55 }
 0x4a5   :  { %v3265_v36 = vmul.f32 -1.442695, %v2712_v59  ;;  %v3254_v59 = vmul.f32 -1.442695, %v5968_v35  ;;  %v2815_v55 = vadd.f32 1.0, %v5798_v39 }
 0x4a7   :  { %4189 = vpow2.f32 %v3265_v36 }
 0x4a8   :  { %4191 = vpow2.f32 %v3243_v25 }
 0x4a9   :  { %4193 = vpow2.f32 %v3262_v60  ;;  %v3252_v60 = vmul.f32 -1.442695, %v5970_v20 }
 0x4aa   :  { %4195 = vpow2.f32 %v3244_v1 }
 0x4ab   :  { %4197 = vpow2.f32 %v3261_v50 }
 0x4ac   :  { %4199 = vrcp.f32 %v2822_v22  ;;  %v5972_v22 = vld [vmem:[#allocation18_spill] sm:$0xff] }
 0x4ad   :  { %4201 = vpow2.f32 %v3260_v8  ;;  %v3250_v38 = vmul.f32 -1.442695, %v5972_v22 }
 0x4ae   :  { %4203 = vrcp.f32 %v2823_v44 }
 0x4af   :  { %4205 = vpow2.f32 %v3259_v58 }
 0x4b0   :  { %4207 = vrcp.f32 %v2824_v13  ;;  %v4186_v16 = vpop.eup %4185 }
 0x4b1   :  { %4209 = vpow2.f32 %v3258_v32  ;;  %v4188_v3 = vpop.eup %4187  ;;  %v2841_v57 = vadd.f32 1.0, %v4186_v16  ;;  %v2814_v16 = vadd.f32 1.0, %v5793_v26 }
 0x4b2   :  { %4211 = vrcp.f32 %v2825_v56  ;;  %v2840_v37 = vadd.f32 1.0, %v4188_v3  ;;  %v2816_v56 = vadd.f32 1.0, %v5806_v28 }
 0x4b3   :  { %4213 = vpow2.f32 %v3257_v33 }
 0x4b4   :  { %v4190_v12 = vpop.eup %4189  ;;  %4215 = vrcp.f32 %v2826_v10 }
 0x4b5   :  { %v4192_v47 = vpop.eup %4191  ;;  %4217 = vpow2.f32 %v3256_v29  ;;  %v2842_v19 = vadd.f32 1.0, %v4190_v12  ;;  %v2813_v12 = vadd.f32 1.0, %v5789_v6 }
 0x4b6   :  { %v4194_v25 = vpop.eup %4193  ;;  %4219 = vpow2.f32 %v3255_v30  ;;  %v2820_v8 = vadd.f32 1.0, %v4192_v47  ;;  %v2812_v47 = vadd.f32 1.0, %v5784_v15 }
 0x4b7   :  { %v4196_v36 = vpop.eup %4195  ;;  %4221 = vrcp.f32 %v2842_v19  ;;  %v2839_v49 = vadd.f32 1.0, %v4194_v25  ;;  %v2811_v25 = vadd.f32 1.0, %v5779_v41 }
 0x4b8   :  { %v4198_v17 = vpop.eup %4197  ;;  %4223 = vpow2.f32 %v3254_v59  ;;  %v2821_v51 = vadd.f32 1.0, %v4196_v36 }
 0x4b9   :  { %v5828_v1 = vpop.eup %4199  ;;  %4225 = vrcp.f32 %v2841_v57  ;;  %v2838_v50 = vadd.f32 1.0, %v4198_v17 }
 0x4ba   :  { %v4202_v27 = vpop.eup %4201  ;;  %4227 = vpow2.f32 %v3253_v42 }
 0x4bb   :  { %v4204_v52 = vpop.eup %4203  ;;  %4229 = vrcp.f32 %v2840_v37  ;;  %v2837_v46 = vadd.f32 1.0, %v4202_v27 }
 0x4bc   :  { %v4206_v7 = vpop.eup %4205  ;;  %4231 = vpow2.f32 %v3252_v60 }
 0x4bd   :  { %v4208_v45 = vpop.eup %4207  ;;  %4233 = vrcp.f32 %v2839_v49  ;;  %v2836_v9 = vadd.f32 1.0, %v4206_v7  ;;  %v5975_v7 = vld [vmem:[#allocation10_spill] sm:$0xff] }
 0x4be   :  { %v4210_v2 = vpop.eup %4209  ;;  %4235 = vpow2.f32 %v3251_v62 }
 0x4bf   :  { %v4212_v43 = vpop.eup %4211  ;;  %4237 = vrcp.f32 %v2838_v50  ;;  %v2835_v23 = vadd.f32 1.0, %v4210_v2 }
 0x4c0   :  { %v4214_v14 = vpop.eup %4213  ;;  %4239 = vpow2.f32 %v3250_v38 }
 0x4c1   :  { %v4216_v44 = vpop.eup %4215  ;;  %4241 = vrcp.f32 %v2837_v46  ;;  %v2834_v5 = vadd.f32 1.0, %v4214_v14 }
 0x4c2   :  { %v4218_v21 = vpop.eup %4217  ;;  %4243 = vrcp.f32 %v2821_v51 }
 0x4c3   :  { %v4220_v18 = vpop.eup %4219  ;;  %4245 = vrcp.f32 %v2836_v9  ;;  %v2833_v13 = vadd.f32 1.0, %v4218_v21  ;;  %v5976_v21 = vld [vmem:[#allocation6_spill] sm:$0xff] }
 0x4c4   :  { %v4222_v48 = vpop.eup %4221  ;;  %4247 = vrcp.f32 %v2820_v8  ;;  %v2832_v53 = vadd.f32 1.0, %v4220_v18 }
 0x4c5   :  { %v4224_v58 = vpop.eup %4223  ;;  %4249 = vrcp.f32 %v2835_v23  ;;  %3593 = vmatprep.subr.mxu0 %v4222_v48 }
 0x4c6   :  { %v4226_v0 = vpop.eup %4225  ;;  %4251 = vrcp.f32 %v2819_v54  ;;  %3594 = vmatpush3.msra.mxu0 %v4216_v44  ;;  %v2831_v11 = vadd.f32 1.0, %v4224_v58  ;;  %v3001_v54 = vsub.f32 1.0, %v5976_v21 }
 0x4c7   :  { %v4228_v63 = vpop.eup %4227  ;;  %4253 = vrcp.f32 %v2834_v5  ;;  %3595 = vmatprep.subr.mxu0 %v4226_v0 }
 0x4c8   :  { %v4230_v32 = vpop.eup %4229  ;;  %4255 = vrcp.f32 %v2818_v40  ;;  %3596 = vmatpush3.msra.mxu0 %v4212_v43  ;;  %v2830_v10 = vadd.f32 1.0, %v4228_v63  ;;  %v2912_v43 = vpop.permute.xlu0 %2911 }
 0x4c9   :  { %v4232_v61 = vpop.eup %4231  ;;  %4257 = vrcp.f32 %v2833_v13  ;;  %3597 = vmatprep.subr.mxu0 %v4230_v32 }
 0x4ca   :  { %v4234_v33 = vpop.eup %4233  ;;  %4259 = vrcp.f32 %v2817_v34  ;;  %3598 = vmatpush3.msra.mxu0 %v4208_v45  ;;  %v2829_v30 = vadd.f32 1.0, %v4232_v61 }
 0x4cb   :  { %v4236_v4 = vpop.eup %4235  ;;  %4261 = vrcp.f32 %v2832_v53  ;;  %3599 = vmatprep.subr.mxu0 %v4234_v33 }
 0x4cc   :  { %v4238_v29 = vpop.eup %4237  ;;  %4263 = vrcp.f32 %v2816_v56  ;;  %3600 = vmatpush3.msra.mxu0 %v4204_v52  ;;  %v2828_v35 = vadd.f32 1.0, %v4236_v4  ;;  %v5973_v52 = vld [vmem:[#allocation5_spill] sm:$0xff] }
 0x4cd   :  { %v4240_v28 = vpop.eup %4239  ;;  %4265 = vrcp.f32 %v2831_v11  ;;  %3601 = vmatprep.subr.mxu0 %v4238_v29  ;;  %v5974_v50 = vsub.s32 0, %v5973_v52 }
 0x4ce   :  { %v4242_v3 = vpop.eup %4241  ;;  %4267 = vrcp.f32 %v2815_v55  ;;  %3602 = vmatpush3.msra.mxu0 %v5828_v1  ;;  %v2827_v57 = vadd.f32 1.0, %v4240_v28 }
 0x4cf   :  { %v4244_v39 = vpop.eup %4243  ;;  %4269 = vrcp.f32 %v2830_v10  ;;  %3603 = vmatprep.subr.mxu0 %v4242_v3  ;;  %v2918_v22 = vrot.slane %v5975_v7, %v5974_v50 }
 0x4d0   :  { %v4246_v59 = vpop.eup %4245  ;;  %4271 = vrcp.f32 %v2814_v16  ;;  %3604 = vmatpush3.msra.mxu0 %v4244_v39 }
 0x4d1   :  { %v4248_v26 = vpop.eup %4247  ;;  %4273 = vrcp.f32 %v2829_v30  ;;  %3605 = vmatprep.subr.mxu0 %v4246_v59 }
 0x4d2   :  { %v4250_v19 = vpop.eup %4249  ;;  %4275 = vrcp.f32 %v2813_v12  ;;  %3606 = vmatpush3.msra.mxu0 %v4248_v26 }
 0x4d3   :  { %v4252_v6 = vpop.eup %4251  ;;  %4277 = vrcp.f32 %v2828_v35  ;;  %3607 = vmatprep.subr.mxu0 %v4250_v19 }
 0x4d4   :  { %v4254_v31 = vpop.eup %4253  ;;  %4279 = vrcp.f32 %v2812_v47  ;;  %3608 = vmatpush3.msra.mxu0 %v4252_v6 }
 0x4d5   :  { %v4256_v42 = vpop.eup %4255  ;;  %4281 = vrcp.f32 %v2827_v57  ;;  %3609 = vmatprep.subr.mxu0 %v4254_v31 }
 0x4d6   :  { %v4258_v15 = vpop.eup %4257  ;;  %4283 = vrcp.f32 %v2811_v25  ;;  %3610 = vmatpush3.msra.mxu0 %v4256_v42 }
 0x4d7   :  { %v4260_v36 = vpop.eup %4259  ;;  %3611 = vmatprep.subr.mxu0 %v4258_v15 }
 0x4d8   :  { %v4262_v37 = vpop.eup %4261  ;;  %3612 = vmatpush3.msra.mxu0 %v4260_v36 }
 0x4d9   :  { %v4264_v17 = vpop.eup %4263  ;;  %3613 = vmatprep.subr.mxu0 %v4262_v37 }
 0x4da   :  { %v4266_v41 = vpop.eup %4265  ;;  %3614 = vmatpush3.msra.mxu0 %v4264_v17 }
 0x4db   :  { %v4268_v20 = vpop.eup %4267  ;;  %3615 = vmatprep.subr.mxu0 %v4266_v41 }
 0x4dc   :  { %v4270_v60 = vpop.eup %4269  ;;  %3616 = vmatpush3.msra.mxu0 %v4268_v20 }
 0x4dd   :  { %v4272_v1 = vpop.eup %4271  ;;  %3617 = vmatprep.subr.mxu0 %v4270_v60 }
 0x4de   :  { %v4274_v49 = vpop.eup %4273  ;;  %3618 = vmatpush3.msra.mxu0 %v4272_v1 }
 0x4df   :  { %v4276_v27 = vpop.eup %4275  ;;  %3619 = vmatprep.subr.mxu0 %v4274_v49 }
 0x4e0   :  { %v4278_v24 = vpop.eup %4277  ;;  %3620 = vmatpush3.msra.mxu0 %v4276_v27 }
 0x4e1   :  { %v4280_v62 = vpop.eup %4279  ;;  %3621 = vmatprep.subr.mxu0 %v4278_v24 }
 0x4e2   :  { %v4282_v38 = vpop.eup %4281  ;;  %3622 = vmatpush3.msra.mxu0 %v4280_v62 }
 0x4e3   :  { %v4284_v45 = vpop.eup %4283  ;;  %3623 = vmatprep.subr.mxu0 %v4282_v38 }
 0x4e4   :  { %3624 = vmatpush3.msra.mxu0 %v4284_v45 }
 0x4e5   :  { %2990 = vmatmul.mubr.f32.vlgmr.msra.gmra.mxu0 %v2918_v22 }
 0x5a5   :  { %v3625_v46 = vpop.f32.mrf.mxu0 }
 0x5a7   :  { %v3626_v2 = vpop.f32.mrf.mxu0 }
 0x5a8   :  { %v3627_v51 = vadd.f32 %v3626_v2, %v3625_v46 }
 0x5aa   :  { %v2992_v9 = vadd.f32 %v3627_v51, %v2912_v43 }
 0x5ac   :  { %v3266_v14 = vmul.f32 -1.442695, %v2992_v9 }
 0x5ae   :  { %4285 = vpow2.f32 %v3266_v14 }
 0x5bb   :  { %v4286_v8 = vpop.eup %4285 }
 0x5bc   :  { %v2998_v44 = vadd.f32 1.0, %v4286_v8 }
 0x5be   :  { %4287 = vrcp.f32 %v2998_v44 }
 0x5cb   :  { %v4288_v23 = vpop.eup %4287 }
 0x5cc   :  { %v3003_v18 = vrot.slane %v4288_v23, 7 }
 0x5ce   :  { %v3005_v5 = vmul.f32 %v3003_v18, %v3001_v54 }
 0x5d0   :  { %v3006_v48 = vadd.f32 %v5976_v21, %v3005_v5 }
 0x5d2   :  { %3007 = vst [vmem:[#allocation2 - $0x1] sm:$0x2] %v3006_v48 }
 0x5d3   :  { %4300 = shalt.err (!%p4297_p4)
}
 0x5d4   :  { %3017 = dma.vmem_to_hbm [thread:$0]  %s3015_s22, 16, %s5855_s7, [#allocation3]  }
 0x5d5   :  { %4309 = dma.done.wait [#allocation3], 16  }
 0x5d6   :  { %4310 = vsyncadd [#allocation3], 4294967280 }
 0x5d7   :  { %3021 = vsyncpa [#allocation3], 1 }

</bundles_post_ra>
